<compile_context>
chip_gen: v5e
topology: v5e:2x2
jax: 0.10.0
libtpu: 0.0.40
codegen_flags: <defaults>
</compile_context>

<pallas_src>
import functools
import math

import jax
import jax.numpy as jnp
from jax.experimental import pallas as pl
from jax.experimental.pallas import tpu as pltpu


def round_up(x, m):
    return ((x + m - 1) // m) * m


def _vmem_limit_bytes():
    # v7x has 64 MiB VMEM/TC -> leave headroom; v5e/v6e have 128 MiB (v5e default scoped
    # limit is only 16 MiB, so an explicit override is required there anyway).
    try:
        kind = jax.devices()[0].device_kind.lower()
    except Exception:  # pragma: no cover - defensive
        kind = ""
    return (48 if "v7" in kind else 64) * 1024 * 1024


# --------------------------------------------------------------------------------------
# Kernel A: single-layer LSTM recurrence, gate order reordered to (i, f, o, g).
#   Grid over time chunks ("arbitrary"); h/c carried in VMEM scratch; the input
#   projection emb @ W_ih (+bias) is hoisted to one big-M matmul per chunk; the
#   per-step h @ W_hh runs in bf16 (f32 accumulation).
# --------------------------------------------------------------------------------------
def lstm_kernel(emb_ref, h0_ref, c0_ref, wih_ref, whh_ref, b_ref,
                x_ref, h1_ref, c1_ref,
                h_scr, c_scr, gin_scr, *, t_chunk, b_pad, h_pad):
    @pl.when(pl.program_id(0) == 0)
    def _init():
        h_scr[...] = h0_ref[...]
        c_scr[...] = c0_ref[...]

    # Hoisted input projection + bias for this time chunk: (Tc*Bp, E) @ (E, 4Hp) + b.
    gin_scr[...] = (jnp.dot(emb_ref[...], wih_ref[...],
                            preferred_element_type=jnp.float32)
                    + b_ref[...])

    w_hh = whh_ref[...]          # (Hp, 4Hp) bf16 on the recurrent path
    H = h_pad                    # gate width padded to 128 -> lane-aligned slices

    def step(t, carry):
        h, c = carry             # f32 carries
        row = pl.multiple_of(t * b_pad, b_pad)
        gates = (jnp.dot(h.astype(jnp.bfloat16), w_hh,
                         preferred_element_type=jnp.float32)
                 + gin_scr[pl.ds(row, b_pad), :])                     # (Bp, 4Hp)
        sig = jax.nn.sigmoid(gates[:, :3 * H])                        # fused i,f,o sigmoid
        i_g = sig[:, 0 * H:1 * H]
        f_g = sig[:, 1 * H:2 * H]
        o_g = sig[:, 2 * H:3 * H]
        g_g = jnp.tanh(gates[:, 3 * H:4 * H])
        c_new = f_g * c + i_g * g_g
        h_new = o_g * jnp.tanh(c_new)
        x_ref[pl.ds(row, b_pad), :] = h_new                           # single full-tile store
        return h_new, c_new

    h_f, c_f = jax.lax.fori_loop(0, t_chunk, step,
                                 (h_scr[...], c_scr[...]),
                                 unroll=min(t_chunk, 8))
    h_scr[...] = h_f
    c_scr[...] = c_f
    h1_ref[...] = h_f
    c1_ref[...] = c_f


def run_lstm(emb_flat, h0_p, c0_p, w_ih_p, w_hh_p, b_p, *, T, t_chunk, b_pad, h_pad):
    assert T % t_chunk == 0
    n_chunks = T // t_chunk
    E = emb_flat.shape[1]
    Hp = h_pad
    kern = functools.partial(lstm_kernel, t_chunk=t_chunk, b_pad=b_pad, h_pad=h_pad)
    out_shapes = (jax.ShapeDtypeStruct((T * b_pad, Hp), jnp.float32),   # x, time-major
                  jax.ShapeDtypeStruct((b_pad, Hp), jnp.float32),       # h1
                  jax.ShapeDtypeStruct((b_pad, Hp), jnp.float32))       # c1
    return pl.pallas_call(
        kern,
        out_shape=out_shapes,
        grid=(n_chunks,),
        in_specs=[
            pl.BlockSpec((t_chunk * b_pad, E), lambda i: (i, 0)),   # emb chunk (bf16)
            pl.BlockSpec((b_pad, Hp), lambda i: (0, 0)),            # h0
            pl.BlockSpec((b_pad, Hp), lambda i: (0, 0)),            # c0
            pl.BlockSpec((E, 4 * Hp), lambda i: (0, 0)),            # W_ih^T (bf16, i f o g)
            pl.BlockSpec((Hp, 4 * Hp), lambda i: (0, 0)),           # W_hh^T (bf16, i f o g)
            pl.BlockSpec((1, 4 * Hp), lambda i: (0, 0)),            # b_ih + b_hh (f32)
        ],
        out_specs=(pl.BlockSpec((t_chunk * b_pad, Hp), lambda i: (i, 0)),
                   pl.BlockSpec((b_pad, Hp), lambda i: (0, 0)),
                   pl.BlockSpec((b_pad, Hp), lambda i: (0, 0))),
        scratch_shapes=[pltpu.VMEM((b_pad, Hp), jnp.float32),                 # h carry
                        pltpu.VMEM((b_pad, Hp), jnp.float32),                 # c carry
                        pltpu.VMEM((t_chunk * b_pad, 4 * Hp), jnp.float32)],  # hoisted gates
        compiler_params=pltpu.CompilerParams(
            dimension_semantics=("arbitrary",),
            vmem_limit_bytes=_vmem_limit_bytes()),
    )(emb_flat, h0_p, c0_p, w_ih_p, w_hh_p, b_p)


# --------------------------------------------------------------------------------------
# Kernel B: SoftDotAttention + output projection.
#   grid = (batch, vocab_tiles).  Batch axis is "parallel" (megacore on v7x); vocab axis
#   is "arbitrary" because h_tilde for batch b is computed once (at v==0) into a bf16
#   VMEM scratch and reused by every vocab tile.  The time-major LSTM activations are
#   consumed directly; rows of batch b are read with a strided slice (stride = Bp), so
#   no XLA transpose / extra HBM round trip of x is needed.
# --------------------------------------------------------------------------------------
def attn_proj_kernel(x_ref, ctx_ref, mask_ref, win_ref, wowc_ref, wox_ref,
                     wproj_ref, bproj_ref, out_ref, ht_scr, *, T, b_pad):
    b = pl.program_id(0)

    @pl.when(pl.program_id(1) == 0)
    def _attend():
        # Gather batch-b rows from the time-major activations (in-VMEM strided read).
        x_b = x_ref[pl.ds(b, T, stride=b_pad), :]                     # (T, Hp) f32
        x_bf = x_b.astype(jnp.bfloat16)
        ctx_b = ctx_ref[0]                                            # (Lp, Hp) bf16

        # target = linear_in(h); scores = target . ctx  (bf16 MXU, f32 accumulation)
        target = jnp.dot(x_bf, win_ref[...], preferred_element_type=jnp.float32)
        scores = jax.lax.dot_general(target.astype(jnp.bfloat16), ctx_b,
                                     (((1,), (1,)), ((), ())),
                                     preferred_element_type=jnp.float32)   # (T, Lp)
        scores = scores + mask_ref[0]                                 # additive -1e30 mask

        m = jnp.max(scores, axis=-1, keepdims=True)
        p = jnp.exp(scores - m)
        denom = jnp.sum(p, axis=-1, keepdims=True)
        attn = p * pl.reciprocal(denom, approx=True)                  # EUP reciprocal

        wc = jnp.dot(attn.astype(jnp.bfloat16), ctx_b,
                     preferred_element_type=jnp.float32)              # (T, Hp)
        h_tilde = jnp.tanh(
            jnp.dot(wc.astype(jnp.bfloat16), wowc_ref[...],
                    preferred_element_type=jnp.float32)
            + jnp.dot(x_bf, wox_ref[...], preferred_element_type=jnp.float32))
        ht_scr[...] = h_tilde.astype(jnp.bfloat16)                    # reused by all v-tiles

    logit = (jnp.dot(ht_scr[...], wproj_ref[...],
                     preferred_element_type=jnp.float32)
             + bproj_ref[...])                                        # (T, v_tile)
    out_ref[0] = logit                                                # lane-dense store


def run_attn_proj(x_tm, ctx_p, mask_add, w_in, w_out_wc, w_out_x, w_proj, b_proj,
                  *, B, T, Bp, v_tile):
    Hp = x_tm.shape[1]
    Lp = ctx_p.shape[1]
    Vp = w_proj.shape[1]
    assert Vp % v_tile == 0
    nvt = Vp // v_tile
    kern = functools.partial(attn_proj_kernel, T=T, b_pad=Bp)
    return pl.pallas_call(
        kern,
        out_shape=jax.ShapeDtypeStruct((B, T, Vp), jnp.float32),
        grid=(B, nvt),
        in_specs=[
            pl.BlockSpec((T * Bp, Hp), lambda b, v: (0, 0)),      # x, time-major (resident)
            pl.BlockSpec((1, Lp, Hp), lambda b, v: (b, 0, 0)),    # ctx[b] (bf16)
            pl.BlockSpec((1, 1, Lp), lambda b, v: (b, 0, 0)),     # additive mask[b]
            pl.BlockSpec((Hp, Hp), lambda b, v: (0, 0)),          # linear_in^T (bf16)
            pl.BlockSpec((Hp, Hp), lambda b, v: (0, 0)),          # linear_out^T (wc part)
            pl.BlockSpec((Hp, Hp), lambda b, v: (0, 0)),          # linear_out^T (h part)
            pl.BlockSpec((Hp, v_tile), lambda b, v: (0, v)),      # projection^T tile (bf16)
            pl.BlockSpec((1, v_tile), lambda b, v: (0, v)),       # projection bias tile
        ],
        out_specs=pl.BlockSpec((1, T, v_tile), lambda b, v: (b, 0, v)),
        scratch_shapes=[pltpu.VMEM((T, Hp), jnp.bfloat16)],       # h_tilde cache
        compiler_params=pltpu.CompilerParams(
            dimension_semantics=("parallel", "arbitrary"),
            vmem_limit_bytes=_vmem_limit_bytes()),
    )(x_tm, ctx_p, mask_add, w_in, w_out_wc, w_out_x, w_proj, b_proj)


# --------------------------------------------------------------------------------------
# Parameter init (deterministic, PyTorch-shaped) and forward wrapper
# --------------------------------------------------------------------------------------
def init_params(key, vocab, emb_dim, pad_idx, hidden):
    ks = jax.random.split(key, 9)
    s = 1.0 / float(hidden) ** 0.5

    def u(k, shape):
        return jax.random.uniform(k, shape, jnp.float32, -s, s)

    emb = jax.random.normal(ks[0], (vocab, emb_dim), jnp.float32) * 0.1
    emb = emb.at[pad_idx].set(0.0)            # nn.Embedding padding_idx row == 0
    return dict(
        emb=emb,
        w_ih=u(ks[1], (4 * hidden, emb_dim)),     # lstm.weight_ih_l0 (i, f, g, o)
        w_hh=u(ks[2], (4 * hidden, hidden)),      # lstm.weight_hh_l0
        b_ih=u(ks[3], (4 * hidden,)),
        b_hh=u(ks[4], (4 * hidden,)),
        w_in=u(ks[5], (hidden, hidden)),          # attention.linear_in (no bias)
        w_out=u(ks[6], (hidden, 2 * hidden)),     # attention.linear_out (no bias)
        w_proj=u(ks[7], (vocab, hidden)),         # projection
        b_proj=u(ks[8], (vocab,)),
    )


def speaker_decoder_forward(params, words, ctx, ctx_mask, h0, c0, *, t_chunk=16):
    B, T = words.shape
    V, E = params['emb'].shape
    H = params['w_hh'].shape[1]
    L = ctx.shape[1]

    Bp = round_up(B, 8)       # sublane pad
    Hp = round_up(H, 128)     # lane pad (gate-aligned)
    Lp = round_up(L, 128)
    if V <= 2048:
        Vp, v_tile = round_up(V, 128), round_up(V, 128)
    else:
        Vp, v_tile = round_up(V, 2048), 2048       # vocab tiled for VMEM (v7x: 64 MiB/TC)

    t_chunk = max(1, math.gcd(T, max(1, t_chunk)))   # largest divisor of T not above t_chunk

    # ---- embedding lookup (glue gather); dropout = identity (eval) ----
    emb = jnp.take(params['emb'], words, axis=0)                  # (B, T, E)
    emb_p = jnp.pad(emb, ((0, Bp - B), (0, 0), (0, 0)))           # (Bp, T, E)
    emb_flat = jnp.transpose(emb_p, (1, 0, 2)).reshape(T * Bp, E).astype(jnp.bfloat16)

    # ---- LSTM weight prep: transpose, reorder gates to (i, f, o, g), per-gate pad H->Hp ----
    def prep_gates(w_t):     # (rows, 4H) -> (rows, 4Hp), gate order i, f, o, g
        parts = [jnp.pad(w_t[:, g * H:(g + 1) * H], ((0, 0), (0, Hp - H)))
                 for g in (0, 1, 3, 2)]
        return jnp.concatenate(parts, axis=1)

    w_ih_p = prep_gates(params['w_ih'].T).astype(jnp.bfloat16)                       # (E, 4Hp)
    w_hh_p = prep_gates(jnp.pad(params['w_hh'].T,
                                ((0, Hp - H), (0, 0)))).astype(jnp.bfloat16)         # (Hp, 4Hp)
    b_p = prep_gates((params['b_ih'] + params['b_hh'])[None, :])                     # (1, 4Hp)

    h0_p = jnp.pad(h0[0], ((0, Bp - B), (0, Hp - H)))
    c0_p = jnp.pad(c0[0], ((0, Bp - B), (0, Hp - H)))

    x_tm, h1_p, c1_p = run_lstm(emb_flat, h0_p, c0_p, w_ih_p, w_hh_p, b_p,
                                T=T, t_chunk=t_chunk, b_pad=Bp, h_pad=Hp)

    # ---- attention / projection weight prep (padded, bf16 MXU operands) ----
    w_in_p = jnp.pad(params['w_in'].T, ((0, Hp - H), (0, Hp - H))).astype(jnp.bfloat16)
    w_out_wc_p = jnp.pad(params['w_out'][:, :H].T, ((0, Hp - H), (0, Hp - H))).astype(jnp.bfloat16)
    w_out_x_p = jnp.pad(params['w_out'][:, H:].T, ((0, Hp - H), (0, Hp - H))).astype(jnp.bfloat16)
    w_proj_p = jnp.pad(params['w_proj'].T, ((0, Hp - H), (0, Vp - V))).astype(jnp.bfloat16)
    b_proj_p = jnp.pad(params['b_proj'][None, :], ((0, 0), (0, Vp - V)))

    ctx_p = jnp.pad(ctx, ((0, 0), (0, Lp - L), (0, Hp - H))).astype(jnp.bfloat16)
    mask_add = jnp.where(ctx_mask, -1e30, 0.0).astype(jnp.float32)    # additive mask
    mask_add = jnp.pad(mask_add, ((0, 0), (0, Lp - L)), constant_values=-1e30)[:, None, :]

    logit_p = run_attn_proj(x_tm, ctx_p, mask_add, w_in_p, w_out_wc_p, w_out_x_p,
                            w_proj_p, b_proj_p, B=B, T=T, Bp=Bp, v_tile=v_tile)
    logit = logit_p[:, :, :V]
    h1 = h1_p[:B, :H][None]
    c1 = c1_p[:B, :H][None]
    return logit, h1, c1


# --------------------------------------------------------------------------------------
# Pure-JAX f32 reference (mirrors the PyTorch forward) for correctness check
# --------------------------------------------------------------------------------------
def reference_forward(params, words, ctx, ctx_mask, h0, c0):
    B, T = words.shape
    H = params['w_hh'].shape[1]
    emb = jnp.take(params['emb'], words, axis=0)
    w_ih_t, w_hh_t = params['w_ih'].T, params['w_hh'].T
    b = params['b_ih'] + params['b_hh']

    def step(carry, e_t):
        h, c = carry
        gates = e_t @ w_ih_t + h @ w_hh_t + b
        i = jax.nn.sigmoid(gates[:, :H]); f = jax.nn.sigmoid(gates[:, H:2 * H])
        g = jnp.tanh(gates[:, 2 * H:3 * H]); o = jax.nn.sigmoid(gates[:, 3 * H:])
        c = f * c + i * g
        h = o * jnp.tanh(c)
        return (h, c), h

    (h1, c1), xs = jax.lax.scan(step, (h0[0], c0[0]), jnp.transpose(emb, (1, 0, 2)))
    x = jnp.transpose(xs, (1, 0, 2))
    L = ctx.shape[1]
    x2 = x.reshape(B * T, H)
    ctx_e = jnp.broadcast_to(ctx[:, None], (B, T, L, H)).reshape(B * T, L, H)
    mask_e = jnp.broadcast_to(ctx_mask[:, None], (B, T, L)).reshape(B * T, L)
    target = x2 @ params['w_in'].T
    attn = jnp.einsum('bld,bd->bl', ctx_e, target)
    attn = jnp.where(mask_e, -jnp.inf, attn)
    attn = jax.nn.softmax(attn, axis=1)
    wc = jnp.einsum('bl,bld->bd', attn, ctx_e)
    h_tilde = jnp.tanh(jnp.concatenate([wc, x2], axis=1) @ params['w_out'].T)
    logit = h_tilde.reshape(B, T, H) @ params['w_proj'].T + params['b_proj']
    return logit, h1[None], c1[None]


if __name__ == "__main__":
    VOCAB, EMB, PAD, HID = 11, 16, 0, 32
    B, T, L = 2, 8, 4

    key = jax.random.PRNGKey(0)
    kp, kw, kc, kh, kcc = jax.random.split(key, 5)
    params = init_params(kp, VOCAB, EMB, PAD, HID)

    words = jax.random.randint(kw, (B, T), 0, VOCAB, dtype=jnp.int32)
    ctx = jax.random.normal(kc, (B, L, HID), jnp.float32)
    ctx_mask = jnp.array([[False, False, False, True],
                          [False, False, True, True]])
    h0 = 0.1 * jax.random.normal(kh, (1, B, HID), jnp.float32)
    c0 = 0.1 * jax.random.normal(kcc, (1, B, HID), jnp.float32)

    logit, h1, c1 = speaker_decoder_forward(params, words, ctx, ctx_mask, h0, c0, t_chunk=16)
    jax.block_until_ready((logit, h1, c1))

    ref_logit, ref_h1, ref_c1 = reference_forward(params, words, ctx, ctx_mask, h0, c0)
    assert logit.shape == (B, T, VOCAB) and h1.shape == (1, B, HID) and c1.shape == (1, B, HID)
    # bf16 MXU operands (W_ih, W_hh, ctx, attention/projection weights) vs f32 reference
    assert jnp.allclose(logit, ref_logit, atol=5e-2, rtol=5e-2)
    assert jnp.allclose(h1, ref_h1, atol=5e-2, rtol=5e-2)
    assert jnp.allclose(c1, ref_c1, atol=5e-2, rtol=5e-2)

    print("KERNEL_OK")
</pallas_src>

<mosaic_0001>
module attributes {stable_mosaic.version = 11 : i64} {
  func.func @lstm_kernel(%arg0: i32, %arg1: memref<64x16xbf16, #tpu.memory_space<vmem>>, %arg2: memref<8x128xf32, #tpu.memory_space<vmem>>, %arg3: memref<8x128xf32, #tpu.memory_space<vmem>>, %arg4: memref<16x512xbf16, #tpu.memory_space<vmem>>, %arg5: memref<128x512xbf16, #tpu.memory_space<vmem>>, %arg6: memref<1x512xf32, #tpu.memory_space<vmem>>, %arg7: memref<64x128xf32, #tpu.memory_space<vmem>>, %arg8: memref<8x128xf32, #tpu.memory_space<vmem>>, %arg9: memref<8x128xf32, #tpu.memory_space<vmem>>, %arg10: memref<8x128xf32, #tpu.memory_space<vmem>>, %arg11: memref<8x128xf32, #tpu.memory_space<vmem>>, %arg12: memref<64x512xf32, #tpu.memory_space<vmem>>) attributes {dimension_semantics = [#tpu.dimension_semantics<arbitrary>], iteration_bounds = array<i64: 1>, scalar_prefetch = 0 : i64, scratch_operands = 3 : i64, tpu.core_type = #tpu.core_type<tc>, window_params = [{transform_indices = @transform_0, window_bounds = array<i64: 64, 16>}, {pipeline_mode = #tpu.pipeline_mode<synchronous>, transform_indices = @transform_1, window_bounds = array<i64: 8, 128>}, {pipeline_mode = #tpu.pipeline_mode<synchronous>, transform_indices = @transform_2, window_bounds = array<i64: 8, 128>}, {pipeline_mode = #tpu.pipeline_mode<synchronous>, transform_indices = @transform_3, window_bounds = array<i64: 16, 512>}, {pipeline_mode = #tpu.pipeline_mode<synchronous>, transform_indices = @transform_4, window_bounds = array<i64: 128, 512>}, {pipeline_mode = #tpu.pipeline_mode<synchronous>, transform_indices = @transform_5, window_bounds = array<i64: 1, 512>}, {transform_indices = @transform_6, window_bounds = array<i64: 64, 128>}, {pipeline_mode = #tpu.pipeline_mode<synchronous>, transform_indices = @transform_7, window_bounds = array<i64: 8, 128>}, {pipeline_mode = #tpu.pipeline_mode<synchronous>, transform_indices = @transform_8, window_bounds = array<i64: 8, 128>}]} {
    %c0_i32 = arith.constant 0 : i32
    %0 = arith.cmpi eq, %arg0, %c0_i32 : i32
    %1 = arith.extui %0 : i1 to i32
    %c0_i32_0 = arith.constant 0 : i32
    %2 = arith.cmpi ne, %1, %c0_i32_0 : i32
    scf.if %2 {
      %c0_63 = arith.constant 0 : index
      %c0_64 = arith.constant 0 : index
      %217 = vector.load %arg2[%c0_63, %c0_64] : memref<8x128xf32, #tpu.memory_space<vmem>>, vector<8x128xf32>
      %c0_65 = arith.constant 0 : index
      %c0_66 = arith.constant 0 : index
      %218 = vector.load %arg10[%c0_65, %c0_66] : memref<8x128xf32, #tpu.memory_space<vmem>>, vector<8x128xf32>
      tpu.vector_store %arg10[%c0_65, %c0_66], %217 {strides = array<i32>} : memref<8x128xf32, #tpu.memory_space<vmem>>, vector<8x128xf32>,
      %c0_67 = arith.constant 0 : index
      %c0_68 = arith.constant 0 : index
      %219 = vector.load %arg3[%c0_67, %c0_68] : memref<8x128xf32, #tpu.memory_space<vmem>>, vector<8x128xf32>
      %c0_69 = arith.constant 0 : index
      %c0_70 = arith.constant 0 : index
      %220 = vector.load %arg11[%c0_69, %c0_70] : memref<8x128xf32, #tpu.memory_space<vmem>>, vector<8x128xf32>
      tpu.vector_store %arg11[%c0_69, %c0_70], %219 {strides = array<i32>} : memref<8x128xf32, #tpu.memory_space<vmem>>, vector<8x128xf32>,
    } else {
    }
    %c0 = arith.constant 0 : index
    %c0_1 = arith.constant 0 : index
    %3 = vector.load %arg1[%c0, %c0_1] : memref<64x16xbf16, #tpu.memory_space<vmem>>, vector<64x16xbf16>
    %c0_2 = arith.constant 0 : index
    %c0_3 = arith.constant 0 : index
    %4 = vector.load %arg4[%c0_2, %c0_3] : memref<16x512xbf16, #tpu.memory_space<vmem>>, vector<16x512xbf16>
    %cst = arith.constant dense<0.000000e+00> : vector<64x512xf32>
    %5 = tpu.matmul %3, %4, %cst {dimension_numbers = #tpu.dot_dimension_numbers<[1], [0], [0], [1], [0, 0, 1, 1], [], []>} : vector<64x16xbf16>, vector<16x512xbf16>, vector<64x512xf32> -> vector<64x512xf32>
    %c0_4 = arith.constant 0 : index
    %c0_5 = arith.constant 0 : index
    %6 = vector.load %arg6[%c0_4, %c0_5] : memref<1x512xf32, #tpu.memory_space<vmem>>, vector<1x512xf32>
    %7 = vector.broadcast %6 : vector<1x512xf32> to vector<64x512xf32>
    %8 = arith.addf %5, %7 : vector<64x512xf32>
    %c0_6 = arith.constant 0 : index
    %c0_7 = arith.constant 0 : index
    %9 = vector.load %arg12[%c0_6, %c0_7] : memref<64x512xf32, #tpu.memory_space<vmem>>, vector<64x512xf32>
    tpu.vector_store %arg12[%c0_6, %c0_7], %8 {strides = array<i32>} : memref<64x512xf32, #tpu.memory_space<vmem>>, vector<64x512xf32>,
    %c0_8 = arith.constant 0 : index
    %c0_9 = arith.constant 0 : index
    %10 = vector.load %arg5[%c0_8, %c0_9] : memref<128x512xbf16, #tpu.memory_space<vmem>>, vector<128x512xbf16>
    %c0_10 = arith.constant 0 : index
    %c0_11 = arith.constant 0 : index
    %11 = vector.load %arg10[%c0_10, %c0_11] : memref<8x128xf32, #tpu.memory_space<vmem>>, vector<8x128xf32>
    %c0_12 = arith.constant 0 : index
    %c0_13 = arith.constant 0 : index
    %12 = vector.load %arg11[%c0_12, %c0_13] : memref<8x128xf32, #tpu.memory_space<vmem>>, vector<8x128xf32>
    %c0_i32_14 = arith.constant 0 : i32
    %c8_i32 = arith.constant 8 : i32
    %13 = arith.muli %c0_i32_14, %c8_i32 : i32
    %14 = tpu.assume_multiple %13, 8 : i32
    %15 = arith.truncf %11 : vector<8x128xf32> to vector<8x128xbf16>
    %cst_15 = arith.constant dense<0.000000e+00> : vector<8x512xf32>
    %16 = tpu.matmul %15, %10, %cst_15 {dimension_numbers = #tpu.dot_dimension_numbers<[1], [0], [0], [1], [0, 0, 1, 1], [], []>} : vector<8x128xbf16>, vector<128x512xbf16>, vector<8x512xf32> -> vector<8x512xf32>
    %17 = arith.index_cast %14 : i32 to index
    %c0_16 = arith.constant 0 : index
    %18 = vector.load %arg12[%17, %c0_16] : memref<64x512xf32, #tpu.memory_space<vmem>>, vector<8x512xf32>
    %19 = arith.addf %16, %18 : vector<8x512xf32>
    %20 = vector.extract_strided_slice %19 {offsets = [0, 0], sizes = [8, 384], strides = [1, 1]} : vector<8x512xf32> to vector<8x384xf32>
    %21 = arith.negf %20 : vector<8x384xf32>
    %22 = math.exp %21 : vector<8x384xf32>
    %cst_17 = arith.constant 1.000000e+00 : f32
    %23 = vector.broadcast %cst_17 : f32 to vector<8x384xf32>
    %24 = arith.addf %23, %22 : vector<8x384xf32>
    %25 = arith.divf %23, %24 : vector<8x384xf32>
    %26 = vector.extract_strided_slice %25 {offsets = [0, 0], sizes = [8, 128], strides = [1, 1]} : vector<8x384xf32> to vector<8x128xf32>
    %27 = vector.extract_strided_slice %25 {offsets = [0, 128], sizes = [8, 128], strides = [1, 1]} : vector<8x384xf32> to vector<8x128xf32>
    %28 = vector.extract_strided_slice %25 {offsets = [0, 256], sizes = [8, 128], strides = [1, 1]} : vector<8x384xf32> to vector<8x128xf32>
    %29 = vector.extract_strided_slice %19 {offsets = [0, 384], sizes = [8, 128], strides = [1, 1]} : vector<8x512xf32> to vector<8x128xf32>
    %30 = math.tanh %29 : vector<8x128xf32>
    %31 = arith.mulf %27, %12 : vector<8x128xf32>
    %32 = arith.mulf %26, %30 : vector<8x128xf32>
    %33 = arith.addf %31, %32 : vector<8x128xf32>
    %34 = math.tanh %33 : vector<8x128xf32>
    %35 = arith.mulf %28, %34 : vector<8x128xf32>
    %36 = arith.index_cast %14 : i32 to index
    %c0_18 = arith.constant 0 : index
    %37 = vector.load %arg7[%36, %c0_18] : memref<64x128xf32, #tpu.memory_space<vmem>>, vector<8x128xf32>
    tpu.vector_store %arg7[%36, %c0_18], %35 {strides = array<i32>} : memref<64x128xf32, #tpu.memory_space<vmem>>, vector<8x128xf32>,
    %c1_i32 = arith.constant 1 : i32
    %c8_i32_19 = arith.constant 8 : i32
    %38 = arith.muli %c1_i32, %c8_i32_19 : i32
    %39 = tpu.assume_multiple %38, 8 : i32
    %40 = arith.truncf %35 : vector<8x128xf32> to vector<8x128xbf16>
    %cst_20 = arith.constant dense<0.000000e+00> : vector<8x512xf32>
    %41 = tpu.matmul %40, %10, %cst_20 {dimension_numbers = #tpu.dot_dimension_numbers<[1], [0], [0], [1], [0, 0, 1, 1], [], []>} : vector<8x128xbf16>, vector<128x512xbf16>, vector<8x512xf32> -> vector<8x512xf32>
    %42 = arith.index_cast %39 : i32 to index
    %c0_21 = arith.constant 0 : index
    %43 = vector.load %arg12[%42, %c0_21] : memref<64x512xf32, #tpu.memory_space<vmem>>, vector<8x512xf32>
    %44 = arith.addf %41, %43 : vector<8x512xf32>
    %45 = vector.extract_strided_slice %44 {offsets = [0, 0], sizes = [8, 384], strides = [1, 1]} : vector<8x512xf32> to vector<8x384xf32>
    %46 = arith.negf %45 : vector<8x384xf32>
    %47 = math.exp %46 : vector<8x384xf32>
    %cst_22 = arith.constant 1.000000e+00 : f32
    %48 = vector.broadcast %cst_22 : f32 to vector<8x384xf32>
    %49 = arith.addf %48, %47 : vector<8x384xf32>
    %50 = arith.divf %48, %49 : vector<8x384xf32>
    %51 = vector.extract_strided_slice %50 {offsets = [0, 0], sizes = [8, 128], strides = [1, 1]} : vector<8x384xf32> to vector<8x128xf32>
    %52 = vector.extract_strided_slice %50 {offsets = [0, 128], sizes = [8, 128], strides = [1, 1]} : vector<8x384xf32> to vector<8x128xf32>
    %53 = vector.extract_strided_slice %50 {offsets = [0, 256], sizes = [8, 128], strides = [1, 1]} : vector<8x384xf32> to vector<8x128xf32>
    %54 = vector.extract_strided_slice %44 {offsets = [0, 384], sizes = [8, 128], strides = [1, 1]} : vector<8x512xf32> to vector<8x128xf32>
    %55 = math.tanh %54 : vector<8x128xf32>
    %56 = arith.mulf %52, %33 : vector<8x128xf32>
    %57 = arith.mulf %51, %55 : vector<8x128xf32>
    %58 = arith.addf %56, %57 : vector<8x128xf32>
    %59 = math.tanh %58 : vector<8x128xf32>
    %60 = arith.mulf %53, %59 : vector<8x128xf32>
    %61 = arith.index_cast %39 : i32 to index
    %c0_23 = arith.constant 0 : index
    %62 = vector.load %arg7[%61, %c0_23] : memref<64x128xf32, #tpu.memory_space<vmem>>, vector<8x128xf32>
    tpu.vector_store %arg7[%61, %c0_23], %60 {strides = array<i32>} : memref<64x128xf32, #tpu.memory_space<vmem>>, vector<8x128xf32>,
    %c2_i32 = arith.constant 2 : i32
    %c8_i32_24 = arith.constant 8 : i32
    %63 = arith.muli %c2_i32, %c8_i32_24 : i32
    %64 = tpu.assume_multiple %63, 8 : i32
    %65 = arith.truncf %60 : vector<8x128xf32> to vector<8x128xbf16>
    %cst_25 = arith.constant dense<0.000000e+00> : vector<8x512xf32>
    %66 = tpu.matmul %65, %10, %cst_25 {dimension_numbers = #tpu.dot_dimension_numbers<[1], [0], [0], [1], [0, 0, 1, 1], [], []>} : vector<8x128xbf16>, vector<128x512xbf16>, vector<8x512xf32> -> vector<8x512xf32>
    %67 = arith.index_cast %64 : i32 to index
    %c0_26 = arith.constant 0 : index
    %68 = vector.load %arg12[%67, %c0_26] : memref<64x512xf32, #tpu.memory_space<vmem>>, vector<8x512xf32>
    %69 = arith.addf %66, %68 : vector<8x512xf32>
    %70 = vector.extract_strided_slice %69 {offsets = [0, 0], sizes = [8, 384], strides = [1, 1]} : vector<8x512xf32> to vector<8x384xf32>
    %71 = arith.negf %70 : vector<8x384xf32>
    %72 = math.exp %71 : vector<8x384xf32>
    %cst_27 = arith.constant 1.000000e+00 : f32
    %73 = vector.broadcast %cst_27 : f32 to vector<8x384xf32>
    %74 = arith.addf %73, %72 : vector<8x384xf32>
    %75 = arith.divf %73, %74 : vector<8x384xf32>
    %76 = vector.extract_strided_slice %75 {offsets = [0, 0], sizes = [8, 128], strides = [1, 1]} : vector<8x384xf32> to vector<8x128xf32>
    %77 = vector.extract_strided_slice %75 {offsets = [0, 128], sizes = [8, 128], strides = [1, 1]} : vector<8x384xf32> to vector<8x128xf32>
    %78 = vector.extract_strided_slice %75 {offsets = [0, 256], sizes = [8, 128], strides = [1, 1]} : vector<8x384xf32> to vector<8x128xf32>
    %79 = vector.extract_strided_slice %69 {offsets = [0, 384], sizes = [8, 128], strides = [1, 1]} : vector<8x512xf32> to vector<8x128xf32>
    %80 = math.tanh %79 : vector<8x128xf32>
    %81 = arith.mulf %77, %58 : vector<8x128xf32>
    %82 = arith.mulf %76, %80 : vector<8x128xf32>
    %83 = arith.addf %81, %82 : vector<8x128xf32>
    %84 = math.tanh %83 : vector<8x128xf32>
    %85 = arith.mulf %78, %84 : vector<8x128xf32>
    %86 = arith.index_cast %64 : i32 to index
    %c0_28 = arith.constant 0 : index
    %87 = vector.load %arg7[%86, %c0_28] : memref<64x128xf32, #tpu.memory_space<vmem>>, vector<8x128xf32>
    tpu.vector_store %arg7[%86, %c0_28], %85 {strides = array<i32>} : memref<64x128xf32, #tpu.memory_space<vmem>>, vector<8x128xf32>,
    %c3_i32 = arith.constant 3 : i32
    %c8_i32_29 = arith.constant 8 : i32
    %88 = arith.muli %c3_i32, %c8_i32_29 : i32
    %89 = tpu.assume_multiple %88, 8 : i32
    %90 = arith.truncf %85 : vector<8x128xf32> to vector<8x128xbf16>
    %cst_30 = arith.constant dense<0.000000e+00> : vector<8x512xf32>
    %91 = tpu.matmul %90, %10, %cst_30 {dimension_numbers = #tpu.dot_dimension_numbers<[1], [0], [0], [1], [0, 0, 1, 1], [], []>} : vector<8x128xbf16>, vector<128x512xbf16>, vector<8x512xf32> -> vector<8x512xf32>
    %92 = arith.index_cast %89 : i32 to index
    %c0_31 = arith.constant 0 : index
    %93 = vector.load %arg12[%92, %c0_31] : memref<64x512xf32, #tpu.memory_space<vmem>>, vector<8x512xf32>
    %94 = arith.addf %91, %93 : vector<8x512xf32>
    %95 = vector.extract_strided_slice %94 {offsets = [0, 0], sizes = [8, 384], strides = [1, 1]} : vector<8x512xf32> to vector<8x384xf32>
    %96 = arith.negf %95 : vector<8x384xf32>
    %97 = math.exp %96 : vector<8x384xf32>
    %cst_32 = arith.constant 1.000000e+00 : f32
    %98 = vector.broadcast %cst_32 : f32 to vector<8x384xf32>
    %99 = arith.addf %98, %97 : vector<8x384xf32>
    %100 = arith.divf %98, %99 : vector<8x384xf32>
    %101 = vector.extract_strided_slice %100 {offsets = [0, 0], sizes = [8, 128], strides = [1, 1]} : vector<8x384xf32> to vector<8x128xf32>
    %102 = vector.extract_strided_slice %100 {offsets = [0, 128], sizes = [8, 128], strides = [1, 1]} : vector<8x384xf32> to vector<8x128xf32>
    %103 = vector.extract_strided_slice %100 {offsets = [0, 256], sizes = [8, 128], strides = [1, 1]} : vector<8x384xf32> to vector<8x128xf32>
    %104 = vector.extract_strided_slice %94 {offsets = [0, 384], sizes = [8, 128], strides = [1, 1]} : vector<8x512xf32> to vector<8x128xf32>
    %105 = math.tanh %104 : vector<8x128xf32>
    %106 = arith.mulf %102, %83 : vector<8x128xf32>
    %107 = arith.mulf %101, %105 : vector<8x128xf32>
    %108 = arith.addf %106, %107 : vector<8x128xf32>
    %109 = math.tanh %108 : vector<8x128xf32>
    %110 = arith.mulf %103, %109 : vector<8x128xf32>
    %111 = arith.index_cast %89 : i32 to index
    %c0_33 = arith.constant 0 : index
    %112 = vector.load %arg7[%111, %c0_33] : memref<64x128xf32, #tpu.memory_space<vmem>>, vector<8x128xf32>
    tpu.vector_store %arg7[%111, %c0_33], %110 {strides = array<i32>} : memref<64x128xf32, #tpu.memory_space<vmem>>, vector<8x128xf32>,
    %c4_i32 = arith.constant 4 : i32
    %c8_i32_34 = arith.constant 8 : i32
    %113 = arith.muli %c4_i32, %c8_i32_34 : i32
    %114 = tpu.assume_multiple %113, 8 : i32
    %115 = arith.truncf %110 : vector<8x128xf32> to vector<8x128xbf16>
    %cst_35 = arith.constant dense<0.000000e+00> : vector<8x512xf32>
    %116 = tpu.matmul %115, %10, %cst_35 {dimension_numbers = #tpu.dot_dimension_numbers<[1], [0], [0], [1], [0, 0, 1, 1], [], []>} : vector<8x128xbf16>, vector<128x512xbf16>, vector<8x512xf32> -> vector<8x512xf32>
    %117 = arith.index_cast %114 : i32 to index
    %c0_36 = arith.constant 0 : index
    %118 = vector.load %arg12[%117, %c0_36] : memref<64x512xf32, #tpu.memory_space<vmem>>, vector<8x512xf32>
    %119 = arith.addf %116, %118 : vector<8x512xf32>
    %120 = vector.extract_strided_slice %119 {offsets = [0, 0], sizes = [8, 384], strides = [1, 1]} : vector<8x512xf32> to vector<8x384xf32>
    %121 = arith.negf %120 : vector<8x384xf32>
    %122 = math.exp %121 : vector<8x384xf32>
    %cst_37 = arith.constant 1.000000e+00 : f32
    %123 = vector.broadcast %cst_37 : f32 to vector<8x384xf32>
    %124 = arith.addf %123, %122 : vector<8x384xf32>
    %125 = arith.divf %123, %124 : vector<8x384xf32>
    %126 = vector.extract_strided_slice %125 {offsets = [0, 0], sizes = [8, 128], strides = [1, 1]} : vector<8x384xf32> to vector<8x128xf32>
    %127 = vector.extract_strided_slice %125 {offsets = [0, 128], sizes = [8, 128], strides = [1, 1]} : vector<8x384xf32> to vector<8x128xf32>
    %128 = vector.extract_strided_slice %125 {offsets = [0, 256], sizes = [8, 128], strides = [1, 1]} : vector<8x384xf32> to vector<8x128xf32>
    %129 = vector.extract_strided_slice %119 {offsets = [0, 384], sizes = [8, 128], strides = [1, 1]} : vector<8x512xf32> to vector<8x128xf32>
    %130 = math.tanh %129 : vector<8x128xf32>
    %131 = arith.mulf %127, %108 : vector<8x128xf32>
    %132 = arith.mulf %126, %130 : vector<8x128xf32>
    %133 = arith.addf %131, %132 : vector<8x128xf32>
    %134 = math.tanh %133 : vector<8x128xf32>
    %135 = arith.mulf %128, %134 : vector<8x128xf32>
    %136 = arith.index_cast %114 : i32 to index
    %c0_38 = arith.constant 0 : index
    %137 = vector.load %arg7[%136, %c0_38] : memref<64x128xf32, #tpu.memory_space<vmem>>, vector<8x128xf32>
    tpu.vector_store %arg7[%136, %c0_38], %135 {strides = array<i32>} : memref<64x128xf32, #tpu.memory_space<vmem>>, vector<8x128xf32>,
    %c5_i32 = arith.constant 5 : i32
    %c8_i32_39 = arith.constant 8 : i32
    %138 = arith.muli %c5_i32, %c8_i32_39 : i32
    %139 = tpu.assume_multiple %138, 8 : i32
    %140 = arith.truncf %135 : vector<8x128xf32> to vector<8x128xbf16>
    %cst_40 = arith.constant dense<0.000000e+00> : vector<8x512xf32>
    %141 = tpu.matmul %140, %10, %cst_40 {dimension_numbers = #tpu.dot_dimension_numbers<[1], [0], [0], [1], [0, 0, 1, 1], [], []>} : vector<8x128xbf16>, vector<128x512xbf16>, vector<8x512xf32> -> vector<8x512xf32>
    %142 = arith.index_cast %139 : i32 to index
    %c0_41 = arith.constant 0 : index
    %143 = vector.load %arg12[%142, %c0_41] : memref<64x512xf32, #tpu.memory_space<vmem>>, vector<8x512xf32>
    %144 = arith.addf %141, %143 : vector<8x512xf32>
    %145 = vector.extract_strided_slice %144 {offsets = [0, 0], sizes = [8, 384], strides = [1, 1]} : vector<8x512xf32> to vector<8x384xf32>
    %146 = arith.negf %145 : vector<8x384xf32>
    %147 = math.exp %146 : vector<8x384xf32>
    %cst_42 = arith.constant 1.000000e+00 : f32
    %148 = vector.broadcast %cst_42 : f32 to vector<8x384xf32>
    %149 = arith.addf %148, %147 : vector<8x384xf32>
    %150 = arith.divf %148, %149 : vector<8x384xf32>
    %151 = vector.extract_strided_slice %150 {offsets = [0, 0], sizes = [8, 128], strides = [1, 1]} : vector<8x384xf32> to vector<8x128xf32>
    %152 = vector.extract_strided_slice %150 {offsets = [0, 128], sizes = [8, 128], strides = [1, 1]} : vector<8x384xf32> to vector<8x128xf32>
    %153 = vector.extract_strided_slice %150 {offsets = [0, 256], sizes = [8, 128], strides = [1, 1]} : vector<8x384xf32> to vector<8x128xf32>
    %154 = vector.extract_strided_slice %144 {offsets = [0, 384], sizes = [8, 128], strides = [1, 1]} : vector<8x512xf32> to vector<8x128xf32>
    %155 = math.tanh %154 : vector<8x128xf32>
    %156 = arith.mulf %152, %133 : vector<8x128xf32>
    %157 = arith.mulf %151, %155 : vector<8x128xf32>
    %158 = arith.addf %156, %157 : vector<8x128xf32>
    %159 = math.tanh %158 : vector<8x128xf32>
    %160 = arith.mulf %153, %159 : vector<8x128xf32>
    %161 = arith.index_cast %139 : i32 to index
    %c0_43 = arith.constant 0 : index
    %162 = vector.load %arg7[%161, %c0_43] : memref<64x128xf32, #tpu.memory_space<vmem>>, vector<8x128xf32>
    tpu.vector_store %arg7[%161, %c0_43], %160 {strides = array<i32>} : memref<64x128xf32, #tpu.memory_space<vmem>>, vector<8x128xf32>,
    %c6_i32 = arith.constant 6 : i32
    %c8_i32_44 = arith.constant 8 : i32
    %163 = arith.muli %c6_i32, %c8_i32_44 : i32
    %164 = tpu.assume_multiple %163, 8 : i32
    %165 = arith.truncf %160 : vector<8x128xf32> to vector<8x128xbf16>
    %cst_45 = arith.constant dense<0.000000e+00> : vector<8x512xf32>
    %166 = tpu.matmul %165, %10, %cst_45 {dimension_numbers = #tpu.dot_dimension_numbers<[1], [0], [0], [1], [0, 0, 1, 1], [], []>} : vector<8x128xbf16>, vector<128x512xbf16>, vector<8x512xf32> -> vector<8x512xf32>
    %167 = arith.index_cast %164 : i32 to index
    %c0_46 = arith.constant 0 : index
    %168 = vector.load %arg12[%167, %c0_46] : memref<64x512xf32, #tpu.memory_space<vmem>>, vector<8x512xf32>
    %169 = arith.addf %166, %168 : vector<8x512xf32>
    %170 = vector.extract_strided_slice %169 {offsets = [0, 0], sizes = [8, 384], strides = [1, 1]} : vector<8x512xf32> to vector<8x384xf32>
    %171 = arith.negf %170 : vector<8x384xf32>
    %172 = math.exp %171 : vector<8x384xf32>
    %cst_47 = arith.constant 1.000000e+00 : f32
    %173 = vector.broadcast %cst_47 : f32 to vector<8x384xf32>
    %174 = arith.addf %173, %172 : vector<8x384xf32>
    %175 = arith.divf %173, %174 : vector<8x384xf32>
    %176 = vector.extract_strided_slice %175 {offsets = [0, 0], sizes = [8, 128], strides = [1, 1]} : vector<8x384xf32> to vector<8x128xf32>
    %177 = vector.extract_strided_slice %175 {offsets = [0, 128], sizes = [8, 128], strides = [1, 1]} : vector<8x384xf32> to vector<8x128xf32>
    %178 = vector.extract_strided_slice %175 {offsets = [0, 256], sizes = [8, 128], strides = [1, 1]} : vector<8x384xf32> to vector<8x128xf32>
    %179 = vector.extract_strided_slice %169 {offsets = [0, 384], sizes = [8, 128], strides = [1, 1]} : vector<8x512xf32> to vector<8x128xf32>
    %180 = math.tanh %179 : vector<8x128xf32>
    %181 = arith.mulf %177, %158 : vector<8x128xf32>
    %182 = arith.mulf %176, %180 : vector<8x128xf32>
    %183 = arith.addf %181, %182 : vector<8x128xf32>
    %184 = math.tanh %183 : vector<8x128xf32>
    %185 = arith.mulf %178, %184 : vector<8x128xf32>
    %186 = arith.index_cast %164 : i32 to index
    %c0_48 = arith.constant 0 : index
    %187 = vector.load %arg7[%186, %c0_48] : memref<64x128xf32, #tpu.memory_space<vmem>>, vector<8x128xf32>
    tpu.vector_store %arg7[%186, %c0_48], %185 {strides = array<i32>} : memref<64x128xf32, #tpu.memory_space<vmem>>, vector<8x128xf32>,
    %c7_i32 = arith.constant 7 : i32
    %c8_i32_49 = arith.constant 8 : i32
    %188 = arith.muli %c7_i32, %c8_i32_49 : i32
    %189 = tpu.assume_multiple %188, 8 : i32
    %190 = arith.truncf %185 : vector<8x128xf32> to vector<8x128xbf16>
    %cst_50 = arith.constant dense<0.000000e+00> : vector<8x512xf32>
    %191 = tpu.matmul %190, %10, %cst_50 {dimension_numbers = #tpu.dot_dimension_numbers<[1], [0], [0], [1], [0, 0, 1, 1], [], []>} : vector<8x128xbf16>, vector<128x512xbf16>, vector<8x512xf32> -> vector<8x512xf32>
    %192 = arith.index_cast %189 : i32 to index
    %c0_51 = arith.constant 0 : index
    %193 = vector.load %arg12[%192, %c0_51] : memref<64x512xf32, #tpu.memory_space<vmem>>, vector<8x512xf32>
    %194 = arith.addf %191, %193 : vector<8x512xf32>
    %195 = vector.extract_strided_slice %194 {offsets = [0, 0], sizes = [8, 384], strides = [1, 1]} : vector<8x512xf32> to vector<8x384xf32>
    %196 = arith.negf %195 : vector<8x384xf32>
    %197 = math.exp %196 : vector<8x384xf32>
    %cst_52 = arith.constant 1.000000e+00 : f32
    %198 = vector.broadcast %cst_52 : f32 to vector<8x384xf32>
    %199 = arith.addf %198, %197 : vector<8x384xf32>
    %200 = arith.divf %198, %199 : vector<8x384xf32>
    %201 = vector.extract_strided_slice %200 {offsets = [0, 0], sizes = [8, 128], strides = [1, 1]} : vector<8x384xf32> to vector<8x128xf32>
    %202 = vector.extract_strided_slice %200 {offsets = [0, 128], sizes = [8, 128], strides = [1, 1]} : vector<8x384xf32> to vector<8x128xf32>
    %203 = vector.extract_strided_slice %200 {offsets = [0, 256], sizes = [8, 128], strides = [1, 1]} : vector<8x384xf32> to vector<8x128xf32>
    %204 = vector.extract_strided_slice %194 {offsets = [0, 384], sizes = [8, 128], strides = [1, 1]} : vector<8x512xf32> to vector<8x128xf32>
    %205 = math.tanh %204 : vector<8x128xf32>
    %206 = arith.mulf %202, %183 : vector<8x128xf32>
    %207 = arith.mulf %201, %205 : vector<8x128xf32>
    %208 = arith.addf %206, %207 : vector<8x128xf32>
    %209 = math.tanh %208 : vector<8x128xf32>
    %210 = arith.mulf %203, %209 : vector<8x128xf32>
    %211 = arith.index_cast %189 : i32 to index
    %c0_53 = arith.constant 0 : index
    %212 = vector.load %arg7[%211, %c0_53] : memref<64x128xf32, #tpu.memory_space<vmem>>, vector<8x128xf32>
    tpu.vector_store %arg7[%211, %c0_53], %210 {strides = array<i32>} : memref<64x128xf32, #tpu.memory_space<vmem>>, vector<8x128xf32>,
    %c8_i32_54 = arith.constant 8 : i32
    %c0_55 = arith.constant 0 : index
    %c0_56 = arith.constant 0 : index
    %213 = vector.load %arg10[%c0_55, %c0_56] : memref<8x128xf32, #tpu.memory_space<vmem>>, vector<8x128xf32>
    tpu.vector_store %arg10[%c0_55, %c0_56], %210 {strides = array<i32>} : memref<8x128xf32, #tpu.memory_space<vmem>>, vector<8x128xf32>,
    %c0_57 = arith.constant 0 : index
    %c0_58 = arith.constant 0 : index
    %214 = vector.load %arg11[%c0_57, %c0_58] : memref<8x128xf32, #tpu.memory_space<vmem>>, vector<8x128xf32>
    tpu.vector_store %arg11[%c0_57, %c0_58], %208 {strides = array<i32>} : memref<8x128xf32, #tpu.memory_space<vmem>>, vector<8x128xf32>,
    %c0_59 = arith.constant 0 : index
    %c0_60 = arith.constant 0 : index
    %215 = vector.load %arg8[%c0_59, %c0_60] : memref<8x128xf32, #tpu.memory_space<vmem>>, vector<8x128xf32>
    tpu.vector_store %arg8[%c0_59, %c0_60], %210 {strides = array<i32>} : memref<8x128xf32, #tpu.memory_space<vmem>>, vector<8x128xf32>,
    %c0_61 = arith.constant 0 : index
    %c0_62 = arith.constant 0 : index
    %216 = vector.load %arg9[%c0_61, %c0_62] : memref<8x128xf32, #tpu.memory_space<vmem>>, vector<8x128xf32>
    tpu.vector_store %arg9[%c0_61, %c0_62], %208 {strides = array<i32>} : memref<8x128xf32, #tpu.memory_space<vmem>>, vector<8x128xf32>,
    return
  }
  func.func @transform_0(%arg0: i32) -> (i32, i32) {
    %c0_i32 = arith.constant 0 : i32
    %c0_i32_0 = arith.constant 0 : i32
    return %arg0, %c0_i32 : i32, i32
  }
  func.func @transform_1(%arg0: i32) -> (i32, i32) {
    %c0_i32 = arith.constant 0 : i32
    %c0_i32_0 = arith.constant 0 : i32
    %c0_i32_1 = arith.constant 0 : i32
    return %c0_i32, %c0_i32_0 : i32, i32
  }
  func.func @transform_2(%arg0: i32) -> (i32, i32) {
    %c0_i32 = arith.constant 0 : i32
    %c0_i32_0 = arith.constant 0 : i32
    %c0_i32_1 = arith.constant 0 : i32
    return %c0_i32, %c0_i32_0 : i32, i32
  }
  func.func @transform_3(%arg0: i32) -> (i32, i32) {
    %c0_i32 = arith.constant 0 : i32
    %c0_i32_0 = arith.constant 0 : i32
    %c0_i32_1 = arith.constant 0 : i32
    return %c0_i32, %c0_i32_0 : i32, i32
  }
  func.func @transform_4(%arg0: i32) -> (i32, i32) {
    %c0_i32 = arith.constant 0 : i32
    %c0_i32_0 = arith.constant 0 : i32
    %c0_i32_1 = arith.constant 0 : i32
    return %c0_i32, %c0_i32_0 : i32, i32
  }
  func.func @transform_5(%arg0: i32) -> (i32, i32) {
    %c0_i32 = arith.constant 0 : i32
    %c0_i32_0 = arith.constant 0 : i32
    %c0_i32_1 = arith.constant 0 : i32
    return %c0_i32, %c0_i32_0 : i32, i32
  }
  func.func @transform_6(%arg0: i32) -> (i32, i32) {
    %c0_i32 = arith.constant 0 : i32
    %c0_i32_0 = arith.constant 0 : i32
    return %arg0, %c0_i32 : i32, i32
  }
  func.func @transform_7(%arg0: i32) -> (i32, i32) {
    %c0_i32 = arith.constant 0 : i32
    %c0_i32_0 = arith.constant 0 : i32
    %c0_i32_1 = arith.constant 0 : i32
    return %c0_i32, %c0_i32_0 : i32, i32
  }
  func.func @transform_8(%arg0: i32) -> (i32, i32) {
    %c0_i32 = arith.constant 0 : i32
    %c0_i32_0 = arith.constant 0 : i32
    %c0_i32_1 = arith.constant 0 : i32
    return %c0_i32, %c0_i32_0 : i32, i32
  }
}

</mosaic_0001>

<bundles_post_ra>
// kernel: tpu_custom_call.1
= control target key start
LH: loop header
LB: loop body
LE: loop exit
PB: predicated region body
PF: predicated region fallthrough
CT: control target
= control target key end

     0   :  { %14 = vsyncpa [#allocation6], 0  ;;  %s2625_s0 = inlined_call_operand.vmem [shape: bf16[64,16], index: 0, kind: input, shape index: {}]   ;;  %s2626_s1 = inlined_call_operand.vmem [shape: f32[8,128], index: 1, kind: input, shape index: {}]   ;;  %s2627_s2 = inlined_call_operand.hbm [shape: f32[8,128], index: 2, kind: input, shape index: {}]   ;;  %s2628_s3 = inlined_call_operand.vmem [shape: bf16[16,512], index: 3, kind: input, shape index: {}]   ;;  %s2629_s4 = inlined_call_operand.hbm [shape: bf16[128,512], index: 4, kind: input, shape index: {}]   ;;  %s2630_s5 = inlined_call_operand.vmem [shape: f32[1,512], index: 5, kind: input, shape index: {}]   ;;  %s2631_s6 = inlined_call_operand.hbm [shape: f32[64,128], index: 6, kind: output, shape index: {0}]   ;;  %s2632_s7 = inlined_call_operand.hbm [shape: f32[8,128], index: 7, kind: output, shape index: {1}]   ;;  %s2633_s8 = inlined_call_operand.hbm [shape: f32[8,128], index: 8, kind: output, shape index: {2}]  }
   0x1   :  { %15 = vsyncpa [#allocation9], 0 }
   0x2   :  { %16 = vsyncpa [#allocation7], 0 }
   0x3   :  { %17 = vsyncpa [#allocation12], 0  ;;  %s27_s29 = sshll.u32 %s2627_s2, 4  ;;  %s2050_s30 = smov [#allocation5]   ;;  %s28_s29 = int_to_ptr.hbm [resolvable:$true] %s27_s29 }
   0x4   :  { %s29_s9 = sshll.u32 %s2050_s30, 4  ;;  %s39_s12 = sshll.u32 %s2629_s4, 4  ;;  %s30_s9 = int_to_ptr.vmem [resolvable:$true] %s29_s9  ;;  %s40_s12 = int_to_ptr.hbm [resolvable:$true] %s39_s12 }
   0x5   :  { %32 = dma.hbm_to_vmem [thread:$0]  %s28_s29, 128, %s30_s9, [#allocation6]  }
   0x6   :  { %s2051_s13 = smov [#allocation8]   ;;  %s2052_s15 = smov 256  }
   0x7   :  { %s41_s14 = sshll.u32 %s2051_s13, 4  ;;  %s2053_s16 = smov 16   ;;  %s42_s14 = int_to_ptr.vmem [resolvable:$true] %s41_s14 }
   0x8   :  { %47 = dma.hbm_to_vmem [thread:$0]  %s40_s12, 4096, %s42_s14, [#allocation9], %s2052_s15, %s2052_s15, %s2053_s16  }
   0x9   :  { %2042 = dma.done.wait [#allocation6], 128  }
   0xa   :  { %2043 = vsyncadd [#allocation6], 4294967168 }
   0xb   :  { %2044 = dma.done.wait [#allocation9], 4096  }
   0xc   :  { %2045 = vsyncadd [#allocation9], 4294963200  ;;  %v1563_v0 = vld [vmem:[%s2628_s3] sm:$0xf]  ;;  %v1751_v1 = vld [vmem:[%s2628_s3 + $0xc] sm:$0xf0] }
   0xd   :  { %v1749_v2 = vld [vmem:[%s2628_s3 + $0x4] sm:$0xf]  ;;  %v1564_v3 = vor.u32 %v1751_v1, %v1563_v0  ;;  %v1565_v4 = vld [vmem:[%s2628_s3 + $0x10] sm:$0xf0]  ;;  %v1571_v5 = vld [vmem:[%s2628_s3 + $0x8] sm:$0xf] }
   0xe   :  { %v1752_v6 = vld [vmem:[%s2628_s3 + $0x14] sm:$0xf0]  ;;  %v1568_v7 = vor.u32 %v1749_v2, %v1565_v4  ;;  %v1750_v9 = vld [vmem:[%s2628_s3 + $0xc] sm:$0xf]  ;;  %v1573_v10 = vld [vmem:[%s2628_s3 + $0x18] sm:$0xf0] }
   0xf   :  { %v1572_v8 = vor.u32 %v1752_v6, %v1571_v5  ;;  %v1745_v11 = vld [vmem:[%s2625_s0] sm:$0xff]  ;;  %vm129_vm0 = vcmask 130048   ;;  %149 = vmatpush.bf16.msra.mxu0 %v1564_v3  ;;  %v1576_v12 = vor.u32 %v1750_v9, %v1573_v10  ;;  %v1707_v13 = vld [vmem:[#allocation8 + $0xe0] sm:$0xf]  ;;  %v1783_v14 = vld [vmem:[#allocation8 + $0xec] sm:$0xf0] }
  0x10   :  { %v1781_v15 = vld [vmem:[#allocation8 + $0xe4] sm:$0xf]  ;;  %178 = vmatpush.bf16.msra.mxu1 %v1568_v7  ;;  %v2137_v16 = vor.u32 %v1783_v14, %v1707_v13  ;;  %v1709_v17 = vld [vmem:[#allocation8 + $0xf0] sm:$0xf0]  ;;  %v1715_v18 = vld [vmem:[#allocation8 + $0xe8] sm:$0xf] }
  0x11   :  { %207 = vmatpush.bf16.msra.mxu2 %v1572_v8  ;;  %v1784_v19 = vld [vmem:[#allocation8 + $0xf4] sm:$0xf0]  ;;  %236 = vmatpush.bf16.msra.mxu3 %v1576_v12  ;;  %v2139_v20 = vor.u32 %v1781_v15, %v1709_v17  ;;  %v1691_v22 = vld [vmem:[#allocation8 + $0xc0] sm:$0xf]  ;;  %v1779_v23 = vld [vmem:[#allocation8 + $0xcc] sm:$0xf0] }
  0x12   :  { %v2141_v21 = vor.u32 %v1784_v19, %v1715_v18  ;;  %v1777_v24 = vld [vmem:[#allocation8 + $0xc4] sm:$0xf]  ;;  %1577 = vmatmul.msk.bf16.vlgmr.msra.gmra.mxu0 %vm129_vm0, %v1745_v11  ;;  %v1693_v25 = vld [vmem:[#allocation8 + $0xd0] sm:$0xf0]  ;;  %v1699_v26 = vld [vmem:[#allocation8 + $0xc8] sm:$0xf]  ;;  %v2148_v30 = vor.u32 %v1779_v23, %v1691_v22 }
  0x13   :  { %v1780_v27 = vld [vmem:[#allocation8 + $0xd4] sm:$0xf0]  ;;  %1581 = vmatmul.msk.bf16.vlgmr.msra.gmra.mxu1 %vm129_vm0, %v1745_v11  ;;  %v1782_v28 = vld [vmem:[#allocation8 + $0xec] sm:$0xf]  ;;  %v1717_v29 = vld [vmem:[#allocation8 + $0xf8] sm:$0xf0]  ;;  %492 = vmatpush.bf16.msrb.mxu0 %v2137_v16  ;;  %v2154_v34 = vor.u32 %v1777_v24, %v1693_v25 }
  0x14   :  { %1585 = vmatmul.msk.bf16.vlgmr.msra.gmra.mxu2 %vm129_vm0, %v1745_v11  ;;  %1589 = vmatmul.msk.bf16.vlgmr.msra.gmra.mxu3 %vm129_vm0, %v1745_v11  ;;  %v2150_v31 = vor.u32 %v1782_v28, %v1717_v29  ;;  %v1675_v32 = vld [vmem:[#allocation8 + $0xa0] sm:$0xf]  ;;  %v1775_v33 = vld [vmem:[#allocation8 + $0xac] sm:$0xf0]  ;;  %v2156_v35 = vor.u32 %v1780_v27, %v1699_v26  ;;  %v1773_v36 = vld [vmem:[#allocation8 + $0xa4] sm:$0xf] }
  0x15   :  { %505 = vmatpush.bf16.msrb.mxu1 %v2139_v20  ;;  %518 = vmatpush.bf16.msrb.mxu2 %v2141_v21  ;;  %v1677_v37 = vld [vmem:[#allocation8 + $0xb0] sm:$0xf0]  ;;  %v1683_v38 = vld [vmem:[#allocation8 + $0xa8] sm:$0xf]  ;;  %v1776_v39 = vld [vmem:[#allocation8 + $0xb4] sm:$0xf0]  ;;  %v2162_v43 = vor.u32 %v1775_v33, %v1675_v32 }
  0x16   :  { %531 = vmatpush.bf16.msrb.mxu3 %v2150_v31  ;;  %v1778_v40 = vld [vmem:[#allocation8 + $0xcc] sm:$0xf]  ;;  %v1701_v41 = vld [vmem:[#allocation8 + $0xd8] sm:$0xf0]  ;;  %v1659_v44 = vld [vmem:[#allocation8 + $0x80] sm:$0xf]  ;;  %v2166_v46 = vor.u32 %v1773_v36, %v1677_v37  ;;  %v2168_v47 = vor.u32 %v1776_v39, %v1683_v38 }
  0x17   :  { %v2159_v42 = vor.u32 %v1778_v40, %v1701_v41  ;;  %493 = vmatpush.bf16.msrb.mxu0 %v2148_v30  ;;  %v1774_v45 = vld [vmem:[#allocation8 + $0xac] sm:$0xf]  ;;  %v1771_v48 = vld [vmem:[#allocation8 + $0x8c] sm:$0xf0]  ;;  %v1769_v49 = vld [vmem:[#allocation8 + $0x84] sm:$0xf] }
  0x18   :  { %v1685_v50 = vld [vmem:[#allocation8 + $0xb8] sm:$0xf0]  ;;  %v1661_v51 = vld [vmem:[#allocation8 + $0x90] sm:$0xf0]  ;;  %v1667_v52 = vld [vmem:[#allocation8 + $0x88] sm:$0xf]  ;;  %v2177_v57 = vor.u32 %v1771_v48, %v1659_v44 }
  0x19   :  { %506 = vmatpush.bf16.msrb.mxu1 %v2154_v34  ;;  %519 = vmatpush.bf16.msrb.mxu2 %v2156_v35  ;;  %v1772_v53 = vld [vmem:[#allocation8 + $0x94] sm:$0xf0]  ;;  %v2171_v54 = vor.u32 %v1774_v45, %v1685_v50  ;;  %v1770_v55 = vld [vmem:[#allocation8 + $0x8c] sm:$0xf]  ;;  %v1746_v56 = vld [vmem:[%s2625_s0 + $0x8] sm:$0xff]  ;;  %v2181_v59 = vor.u32 %v1769_v49, %v1661_v51  ;;  %s1493_s4 = sshll.u32 %s2631_s6, 4  ;;  %s1494_s4 = int_to_ptr.hbm [resolvable:$true] %s1493_s4 }
  0x1a   :  { %532 = vmatpush.bf16.msrb.mxu3 %v2159_v42  ;;  %v1669_v58 = vld [vmem:[#allocation8 + $0x98] sm:$0xf0]  ;;  %v2183_v60 = vor.u32 %v1772_v53, %v1667_v52  ;;  %v1643_v61 = vld [vmem:[#allocation8 + $0x60] sm:$0xf]  ;;  %v1767_v62 = vld [vmem:[#allocation8 + $0x6c] sm:$0xf0] }
  0x1b   :  { %494 = vmatpush.bf16.msrb.mxu0 %v2162_v43  ;;  %v1765_v63 = vld [vmem:[#allocation8 + $0x64] sm:$0xf]  ;;  %v1645_v0 = vld [vmem:[#allocation8 + $0x70] sm:$0xf0]  ;;  %v1651_v1 = vld [vmem:[#allocation8 + $0x68] sm:$0xf]  ;;  %v2186_v3 = vor.u32 %v1770_v55, %v1669_v58  ;;  %v2189_v6 = vor.u32 %v1767_v62, %v1643_v61 }
  0x1c   :  { %v1768_v2 = vld [vmem:[#allocation8 + $0x74] sm:$0xf0]  ;;  %v1766_v4 = vld [vmem:[#allocation8 + $0x6c] sm:$0xf]  ;;  %v1653_v5 = vld [vmem:[#allocation8 + $0x78] sm:$0xf0]  ;;  %v2193_v7 = vor.u32 %v1765_v63, %v1645_v0 }
  0x1d   :  { %507 = vmatpush.bf16.msrb.mxu1 %v2166_v46  ;;  %520 = vmatpush.bf16.msrb.mxu2 %v2168_v47  ;;  %v2195_v8 = vor.u32 %v1768_v2, %v1651_v1  ;;  %v1627_v9 = vld [vmem:[#allocation8 + $0x40] sm:$0xf]  ;;  %v1763_v10 = vld [vmem:[#allocation8 + $0x4c] sm:$0xf0]  ;;  %v1761_v11 = vld [vmem:[#allocation8 + $0x44] sm:$0xf]  ;;  %v2199_v15 = vor.u32 %v1766_v4, %v1653_v5 }
  0x1e   :  { %533 = vmatpush.bf16.msrb.mxu3 %v2171_v54  ;;  %v1629_v12 = vld [vmem:[#allocation8 + $0x50] sm:$0xf0]  ;;  %v1635_v13 = vld [vmem:[#allocation8 + $0x48] sm:$0xf]  ;;  %v1764_v14 = vld [vmem:[#allocation8 + $0x54] sm:$0xf0]  ;;  %v2205_v17 = vor.u32 %v1763_v10, %v1627_v9 }
  0x1f   :  { %495 = vmatpush.bf16.msrb.mxu0 %v2177_v57  ;;  %v1611_v18 = vld [vmem:[#allocation8 + $0x20] sm:$0xf]  ;;  %v1759_v19 = vld [vmem:[#allocation8 + $0x2c] sm:$0xf0]  ;;  %v2209_v22 = vor.u32 %v1761_v11, %v1629_v12  ;;  %v2211_v23 = vor.u32 %v1764_v14, %v1635_v13  ;;  %v1757_v24 = vld [vmem:[#allocation8 + $0x24] sm:$0xf] }
  0x20   :  { %v1613_v25 = vld [vmem:[#allocation8 + $0x30] sm:$0xf0]  ;;  %v1619_v26 = vld [vmem:[#allocation8 + $0x28] sm:$0xf]  ;;  %v1760_v27 = vld [vmem:[#allocation8 + $0x34] sm:$0xf0]  ;;  %v2217_v33 = vor.u32 %v1759_v19, %v1611_v18 }
  0x21   :  { %508 = vmatpush.bf16.msrb.mxu1 %v2181_v59  ;;  %521 = vmatpush.bf16.msrb.mxu2 %v2183_v60  ;;  %v1762_v28 = vld [vmem:[#allocation8 + $0x4c] sm:$0xf]  ;;  %v1637_v29 = vld [vmem:[#allocation8 + $0x58] sm:$0xf0]  ;;  %v2221_v38 = vor.u32 %v1757_v24, %v1613_v25  ;;  %v2223_v39 = vor.u32 %v1760_v27, %v1619_v26  ;;  %v1595_v40 = vld [vmem:[#allocation8] sm:$0xf] }
  0x22   :  { %1578 = vmatmul.msk.bf16.gmra.mxu0 %vm129_vm0, %v1746_v56  ;;  %534 = vmatpush.bf16.msrb.mxu3 %v2186_v3  ;;  %v2214_v32 = vor.u32 %v1762_v28, %v1637_v29  ;;  %v1758_v36 = vld [vmem:[#allocation8 + $0x2c] sm:$0xf]  ;;  %v1621_v37 = vld [vmem:[#allocation8 + $0x38] sm:$0xf0]  ;;  %v1755_v41 = vld [vmem:[#allocation8 + $0xc] sm:$0xf0] }
  0x23   :  { %1582 = vmatmul.msk.bf16.gmra.mxu1 %vm129_vm0, %v1746_v56  ;;  %496 = vmatpush.bf16.msrb.mxu0 %v2189_v6  ;;  %v1753_v44 = vld [vmem:[#allocation8 + $0x4] sm:$0xf]  ;;  %v1597_v45 = vld [vmem:[#allocation8 + $0x10] sm:$0xf0]  ;;  %v2226_v48 = vor.u32 %v1758_v36, %v1621_v37  ;;  %v1603_v49 = vld [vmem:[#allocation8 + $0x8] sm:$0xf]  ;;  %v2229_v53 = vor.u32 %v1755_v41, %v1595_v40 }
  0x24   :  { %1586 = vmatmul.msk.bf16.gmra.mxu2 %vm129_vm0, %v1746_v56  ;;  %1590 = vmatmul.msk.bf16.gmra.mxu3 %vm129_vm0, %v1746_v56  ;;  %v1756_v50 = vld [vmem:[#allocation8 + $0x14] sm:$0xf0]  ;;  %v1754_v51 = vld [vmem:[#allocation8 + $0xc] sm:$0xf]  ;;  %v1605_v52 = vld [vmem:[#allocation8 + $0x18] sm:$0xf0]  ;;  %v2233_v55 = vor.u32 %v1753_v44, %v1597_v45 }
  0x25   :  { %509 = vmatpush.bf16.msrb.mxu1 %v2193_v7  ;;  %522 = vmatpush.bf16.msrb.mxu2 %v2195_v8  ;;  %v2235_v56 = vor.u32 %v1756_v50, %v1603_v49  ;;  %v1747_v58 = vld [vmem:[%s2625_s0 + $0x10] sm:$0xff]  ;;  %v2241_v61 = vor.u32 %v1754_v51, %v1605_v52  ;;  %v1748_v62 = vld [vmem:[%s2625_s0 + $0x18] sm:$0xff]  ;;  %v63_v63 = vld [vmem:[%s2626_s1] sm:$0xff]  ;;  %s2055_s20 = smov [#allocation11]   ;;  %s1507_s24 = sshll.u32 %s2632_s7, 4  ;;  %s1508_s24 = int_to_ptr.hbm [resolvable:$true] %s1507_s24 }
  0x26   :  { %535 = vmatpush.bf16.msrb.mxu3 %v2199_v15  ;;  %v324_v0 = vpack.c.bf16 %v63_v63, %v63_v63  ;;  %v79_v4 = vld [vmem:[%s2630_s5] sm:$0xf]  ;;  %s2054_s5 = smov [#allocation10]   ;;  %s1505_s21 = sshll.u32 %s2055_s20, 4  ;;  %s1506_s21 = int_to_ptr.vmem [resolvable:$true] %s1505_s21 }
  0x27   :  { %497 = vmatpush.bf16.msrb.mxu0 %v2205_v17  ;;  %v81_v5 = vperm.slane %v79_v4, 0  ;;  %v82_v10 = vperm.slane %v79_v4, 1  ;;  %v2336_v19 = vperm.slane %v79_v4, 3  ;;  %v83_v24 = vperm.slane %v79_v4, 2  ;;  %s1491_s17 = sshll.u32 %s2054_s5, 4  ;;  %s2056_s25 = smov [#allocation13]   ;;  %s1492_s17 = int_to_ptr.vmem [resolvable:$true] %s1491_s17 }
  0x28   :  { %s1516_s26 = sshll.u32 %s2056_s25, 4  ;;  %s1518_s29 = sshll.u32 %s2633_s8, 4  ;;  %s1517_s26 = int_to_ptr.vmem [resolvable:$true] %s1516_s26  ;;  %s1519_s29 = int_to_ptr.hbm [resolvable:$true] %s1518_s29 }
  0x29   :  { %510 = vmatpush.bf16.msrb.mxu1 %v2209_v22  ;;  %523 = vmatpush.bf16.msrb.mxu2 %v2211_v23  ;;  %s2057_s6 = smov 128   ;;  %s2058_s7 = smov 8  }
  0x2a   :  { %536 = vmatpush.bf16.msrb.mxu3 %v2214_v32 }
  0x2b   :  { %498 = vmatpush.bf16.msrb.mxu0 %v2217_v33 }
  0x2d   :  { %511 = vmatpush.bf16.msrb.mxu1 %v2221_v38  ;;  %524 = vmatpush.bf16.msrb.mxu2 %v2223_v39 }
  0x2e   :  { %537 = vmatpush.bf16.msrb.mxu3 %v2226_v48 }
  0x2f   :  { %499 = vmatpush.bf16.msrb.mxu0 %v2229_v53 }
  0x31   :  { %512 = vmatpush.bf16.msrb.mxu1 %v2233_v55  ;;  %525 = vmatpush.bf16.msrb.mxu2 %v2235_v56 }
  0x32   :  { %1579 = vmatmul.msk.bf16.gmra.mxu0 %vm129_vm0, %v1747_v58  ;;  %538 = vmatpush.bf16.msrb.mxu3 %v2241_v61 }
  0x33   :  { %1583 = vmatmul.msk.bf16.gmra.mxu1 %vm129_vm0, %v1747_v58  ;;  %616 = vmatpush.bf16.msra.mxu0 %v2137_v16 }
  0x34   :  { %1587 = vmatmul.msk.bf16.gmra.mxu2 %vm129_vm0, %v1747_v58  ;;  %1591 = vmatmul.msk.bf16.gmra.mxu3 %vm129_vm0, %v1747_v58 }
  0x35   :  { %629 = vmatpush.bf16.msra.mxu1 %v2139_v20  ;;  %642 = vmatpush.bf16.msra.mxu2 %v2141_v21 }
  0x36   :  { %655 = vmatpush.bf16.msra.mxu3 %v2150_v31 }
  0x37   :  { %617 = vmatpush.bf16.msra.mxu0 %v2148_v30 }
  0x39   :  { %630 = vmatpush.bf16.msra.mxu1 %v2154_v34  ;;  %643 = vmatpush.bf16.msra.mxu2 %v2156_v35 }
  0x3a   :  { %656 = vmatpush.bf16.msra.mxu3 %v2159_v42 }
  0x3b   :  { %618 = vmatpush.bf16.msra.mxu0 %v2162_v43 }
  0x3d   :  { %631 = vmatpush.bf16.msra.mxu1 %v2166_v46  ;;  %644 = vmatpush.bf16.msra.mxu2 %v2168_v47 }
  0x3e   :  { %657 = vmatpush.bf16.msra.mxu3 %v2171_v54 }
  0x3f   :  { %619 = vmatpush.bf16.msra.mxu0 %v2177_v57 }
  0x41   :  { %632 = vmatpush.bf16.msra.mxu1 %v2181_v59  ;;  %645 = vmatpush.bf16.msra.mxu2 %v2183_v60 }
  0x42   :  { %1580 = vmatmul.msk.bf16.gmra.mxu0 %vm129_vm0, %v1748_v62  ;;  %658 = vmatpush.bf16.msra.mxu3 %v2186_v3 }
  0x43   :  { %1584 = vmatmul.msk.bf16.gmra.mxu1 %vm129_vm0, %v1748_v62  ;;  %620 = vmatpush.bf16.msra.mxu0 %v2189_v6 }
  0x44   :  { %1588 = vmatmul.msk.bf16.gmra.mxu2 %vm129_vm0, %v1748_v62  ;;  %1592 = vmatmul.msk.bf16.gmra.mxu3 %vm129_vm0, %v1748_v62 }
  0x45   :  { %633 = vmatpush.bf16.msra.mxu1 %v2193_v7  ;;  %646 = vmatpush.bf16.msra.mxu2 %v2195_v8 }
  0x46   :  { %659 = vmatpush.bf16.msra.mxu3 %v2199_v15 }
  0x47   :  { %621 = vmatpush.bf16.msra.mxu0 %v2205_v17 }
  0x49   :  { %634 = vmatpush.bf16.msra.mxu1 %v2209_v22  ;;  %647 = vmatpush.bf16.msra.mxu2 %v2211_v23 }
  0x4a   :  { %660 = vmatpush.bf16.msra.mxu3 %v2214_v32 }
  0x4b   :  { %622 = vmatpush.bf16.msra.mxu0 %v2217_v33 }
  0x4d   :  { %635 = vmatpush.bf16.msra.mxu1 %v2221_v38  ;;  %648 = vmatpush.bf16.msra.mxu2 %v2223_v39 }
  0x4e   :  { %661 = vmatpush.bf16.msra.mxu3 %v2226_v48 }
  0x4f   :  { %623 = vmatpush.bf16.msra.mxu0 %v2229_v53 }
  0x51   :  { %636 = vmatpush.bf16.msra.mxu1 %v2233_v55  ;;  %649 = vmatpush.bf16.msra.mxu2 %v2235_v56 }
  0x52   :  { %500 = vmatmul.bf16.vlgmr.msrb.gmra.mxu0 %v324_v0  ;;  %662 = vmatpush.bf16.msra.mxu3 %v2241_v61 }
  0x53   :  { %513 = vmatmul.bf16.vlgmr.msrb.gmra.mxu1 %v324_v0  ;;  %741 = vmatpush.bf16.msrb.mxu0 %v2137_v16 }
  0x54   :  { %526 = vmatmul.bf16.vlgmr.msrb.gmra.mxu2 %v324_v0  ;;  %539 = vmatmul.bf16.vlgmr.msrb.gmra.mxu3 %v324_v0 }
  0x55   :  { %754 = vmatpush.bf16.msrb.mxu1 %v2139_v20  ;;  %767 = vmatpush.bf16.msrb.mxu2 %v2141_v21 }
  0x56   :  { %780 = vmatpush.bf16.msrb.mxu3 %v2150_v31 }
  0x57   :  { %742 = vmatpush.bf16.msrb.mxu0 %v2148_v30 }
  0x59   :  { %755 = vmatpush.bf16.msrb.mxu1 %v2154_v34  ;;  %768 = vmatpush.bf16.msrb.mxu2 %v2156_v35 }
  0x5a   :  { %781 = vmatpush.bf16.msrb.mxu3 %v2159_v42 }
  0x5b   :  { %743 = vmatpush.bf16.msrb.mxu0 %v2162_v43 }
  0x5d   :  { %756 = vmatpush.bf16.msrb.mxu1 %v2166_v46  ;;  %769 = vmatpush.bf16.msrb.mxu2 %v2168_v47 }
  0x5e   :  { %782 = vmatpush.bf16.msrb.mxu3 %v2171_v54 }
  0x5f   :  { %744 = vmatpush.bf16.msrb.mxu0 %v2177_v57 }
  0x61   :  { %757 = vmatpush.bf16.msrb.mxu1 %v2181_v59  ;;  %770 = vmatpush.bf16.msrb.mxu2 %v2183_v60 }
  0x62   :  { %783 = vmatpush.bf16.msrb.mxu3 %v2186_v3 }
  0x63   :  { %745 = vmatpush.bf16.msrb.mxu0 %v2189_v6 }
  0x65   :  { %758 = vmatpush.bf16.msrb.mxu1 %v2193_v7  ;;  %771 = vmatpush.bf16.msrb.mxu2 %v2195_v8 }
  0x66   :  { %784 = vmatpush.bf16.msrb.mxu3 %v2199_v15 }
  0x67   :  { %746 = vmatpush.bf16.msrb.mxu0 %v2205_v17 }
  0x69   :  { %759 = vmatpush.bf16.msrb.mxu1 %v2209_v22  ;;  %772 = vmatpush.bf16.msrb.mxu2 %v2211_v23 }
  0x6a   :  { %785 = vmatpush.bf16.msrb.mxu3 %v2214_v32 }
  0x6b   :  { %747 = vmatpush.bf16.msrb.mxu0 %v2217_v33 }
  0x6d   :  { %760 = vmatpush.bf16.msrb.mxu1 %v2221_v38  ;;  %773 = vmatpush.bf16.msrb.mxu2 %v2223_v39 }
  0x6e   :  { %786 = vmatpush.bf16.msrb.mxu3 %v2226_v48 }
  0x6f   :  { %748 = vmatpush.bf16.msrb.mxu0 %v2229_v53 }
  0x71   :  { %761 = vmatpush.bf16.msrb.mxu1 %v2233_v55  ;;  %774 = vmatpush.bf16.msrb.mxu2 %v2235_v56 }
  0x72   :  { %787 = vmatpush.bf16.msrb.mxu3 %v2241_v61 }
  0x8f   :  { %v151_v1 = vpop.f32.mrf.mxu0 }
  0x90   :  { %v180_v2 = vpop.f32.mrf.mxu1 }
  0x97   :  { %v2328_v9 = vpop.f32.mrf.mxu2  ;;  %v2330_v11 = vpop.f32.mrf.mxu3 }
  0x98   :  { %v153_v12 = vpop.f32.mrf.mxu0  ;;  %v182_v14 = vpop.f32.mrf.mxu1 }
  0x99   :  { %v2332_v13 = vadd.f32 %v153_v12, %v81_v5  ;;  %v2334_v18 = vadd.f32 %v182_v14, %v82_v10 }
  0x9f   :  { %v211_v25 = vpop.f32.mrf.mxu2  ;;  %v240_v27 = vpop.f32.mrf.mxu3 }
  0xa0   :  { %v2338_v26 = vadd.f32 %v211_v25, %v83_v24  ;;  %v156_v28 = vpop.f32.mrf.mxu0  ;;  %v2341_v29 = vadd.f32 %v240_v27, %v2336_v19  ;;  %v185_v37 = vpop.f32.mrf.mxu1 }
  0xa1   :  { %v2343_v36 = vadd.f32 %v156_v28, %v81_v5  ;;  %v2345_v40 = vadd.f32 %v185_v37, %v82_v10 }
  0xa7   :  { %v214_v41 = vpop.f32.mrf.mxu2  ;;  %v243_v45 = vpop.f32.mrf.mxu3 }
  0xa8   :  { %v2347_v44 = vadd.f32 %v214_v41, %v83_v24  ;;  %v158_v49 = vpop.f32.mrf.mxu0  ;;  %v2350_v50 = vadd.f32 %v243_v45, %v2336_v19  ;;  %v187_v52 = vpop.f32.mrf.mxu1 }
  0xa9   :  { %v2352_v51 = vadd.f32 %v158_v49, %v81_v5  ;;  %v2354_v58 = vadd.f32 %v187_v52, %v82_v10 }
  0xaa   :  { %2634 = vst [vmem:[#allocation18_spill] sm:$0xff] %v2347_v44 }
  0xab   :  { %2635 = vst [vmem:[#allocation19_spill] sm:$0xff] %v2350_v50 }
  0xac   :  { %2636 = vst [vmem:[#allocation20_spill] sm:$0xff] %v2352_v51 }
  0xad   :  { %2637 = vst [vmem:[#allocation21_spill] sm:$0xff] %v2354_v58 }
  0xaf   :  { %v216_v62 = vpop.f32.mrf.mxu2  ;;  %v245_v0 = vpop.f32.mrf.mxu3 }
  0xb0   :  { %v2356_v63 = vadd.f32 %v216_v62, %v83_v24  ;;  %v161_v4 = vpop.f32.mrf.mxu0  ;;  %v2359_v12 = vadd.f32 %v245_v0, %v2336_v19  ;;  %v190_v25 = vpop.f32.mrf.mxu1 }
  0xb1   :  { %v2361_v14 = vadd.f32 %v161_v4, %v81_v5  ;;  %v2363_v27 = vadd.f32 %v190_v25, %v82_v10 }
  0xb2   :  { %2638 = vst [vmem:[#allocation22_spill] sm:$0xff] %v2356_v63 }
  0xb3   :  { %2639 = vst [vmem:[#allocation23_spill] sm:$0xff] %v2359_v12 }
  0xb4   :  { %2640 = vst [vmem:[#allocation24_spill] sm:$0xff] %v2361_v14 }
  0xb5   :  { %2641 = vst [vmem:[#allocation25_spill] sm:$0xff] %v2363_v27 }
  0xb7   :  { %v219_v28 = vpop.f32.mrf.mxu2  ;;  %v248_v41 = vpop.f32.mrf.mxu3 }
  0xb8   :  { %v2365_v37 = vadd.f32 %v219_v28, %v83_v24  ;;  %v163_v45 = vpop.f32.mrf.mxu0  ;;  %v2368_v49 = vadd.f32 %v248_v41, %v2336_v19  ;;  %v192_v62 = vpop.f32.mrf.mxu1 }
  0xb9   :  { %v2370_v52 = vadd.f32 %v163_v45, %v81_v5  ;;  %v2372_v63 = vadd.f32 %v192_v62, %v82_v10 }
  0xba   :  { %2642 = vst [vmem:[#allocation26_spill] sm:$0xff] %v2365_v37 }
  0xbb   :  { %2643 = vst [vmem:[#allocation27_spill] sm:$0xff] %v2368_v49 }
  0xbc   :  { %2644 = vst [vmem:[#allocation28_spill] sm:$0xff] %v2370_v52 }
  0xbd   :  { %2645 = vst [vmem:[#allocation29_spill] sm:$0xff] %v2372_v63 }
  0xbf   :  { %v221_v0 = vpop.f32.mrf.mxu2  ;;  %v250_v4 = vpop.f32.mrf.mxu3 }
  0xc0   :  { %v2374_v12 = vadd.f32 %v221_v0, %v83_v24  ;;  %v166_v14 = vpop.f32.mrf.mxu0  ;;  %v2377_v25 = vadd.f32 %v250_v4, %v2336_v19  ;;  %v195_v37 = vpop.f32.mrf.mxu1  ;;  %v152_v4 = vadd.f32 %v151_v1, %v81_v5 }
  0xc1   :  { %v2379_v28 = vadd.f32 %v166_v14, %v81_v5  ;;  %v2381_v27 = vadd.f32 %v195_v37, %v82_v10  ;;  %v181_v14 = vadd.f32 %v180_v2, %v82_v10 }
  0xc2   :  { %2646 = vst [vmem:[#allocation30_spill] sm:$0xff] %v2374_v12 }
  0xc3   :  { %2647 = vst [vmem:[#allocation31_spill] sm:$0xff] %v2377_v25 }
  0xc4   :  { %2648 = vst [vmem:[#allocation32_spill] sm:$0xff] %v2379_v28 }
  0xc5   :  { %2649 = vst [vmem:[#allocation33_spill] sm:$0xff] %v2381_v27 }
  0xc7   :  { %v224_v41 = vpop.f32.mrf.mxu2  ;;  %v253_v45 = vpop.f32.mrf.mxu3 }
  0xc8   :  { %v2383_v49 = vadd.f32 %v224_v41, %v83_v24  ;;  %v168_v52 = vpop.f32.mrf.mxu0  ;;  %v2386_v62 = vadd.f32 %v253_v45, %v2336_v19  ;;  %v197_v12 = vpop.f32.mrf.mxu1 }
  0xc9   :  { %v2388_v0 = vadd.f32 %v168_v52, %v81_v5  ;;  %v2390_v63 = vadd.f32 %v197_v12, %v82_v10  ;;  %v210_v52 = vadd.f32 %v2328_v9, %v83_v24  ;;  %v239_v9 = vadd.f32 %v2330_v11, %v2336_v19 }
  0xca   :  { %2650 = vst [vmem:[#allocation34_spill] sm:$0xff] %v2383_v49 }
  0xcb   :  { %2651 = vst [vmem:[#allocation35_spill] sm:$0xff] %v2386_v62 }
  0xcc   :  { %2652 = vst [vmem:[#allocation36_spill] sm:$0xff] %v2388_v0 }
  0xcd   :  { %2653 = vst [vmem:[#allocation37_spill] sm:$0xff] %v2390_v63 }
  0xcf   :  { %v226_v25 = vpop.f32.mrf.mxu2  ;;  %v255_v37 = vpop.f32.mrf.mxu3 }
  0xd0   :  { %v2392_v28 = vadd.f32 %v226_v25, %v83_v24  ;;  %v501_v27 = vpop.f32.mrf.mxu0  ;;  %v2395_v41 = vadd.f32 %v255_v37, %v2336_v19  ;;  %v514_v58 = vpop.f32.mrf.mxu1 }
  0xd1   :  { %v502_v49 = vadd.f32 %v501_v27, %v152_v4  ;;  %v515_v51 = vadd.f32 %v514_v58, %v181_v14 }
  0xd2   :  { %2654 = vst [vmem:[#allocation38_spill] sm:$0xff] %v2392_v28 }
  0xd3   :  { %2655 = vst [vmem:[#allocation39_spill] sm:$0xff] %v2395_v41  ;;  %v1721_v45 = vmul.f32 -1.442695, %v502_v49  ;;  %v1722_v62 = vmul.f32 -1.442695, %v515_v51 }
  0xd5   :  { %1794 = vpow2.f32 %v1721_v45 }
  0xd6   :  { %1796 = vpow2.f32 %v1722_v62 }
  0xd7   :  { %v527_v12 = vpop.f32.mrf.mxu2  ;;  %v540_v5 = vpop.f32.mrf.mxu3 }
  0xd8   :  { %v528_v1 = vadd.f32 %v527_v12, %v210_v52  ;;  %v503_v2 = vpop.f32.mrf.mxu0  ;;  %v516_v10 = vpop.f32.mrf.mxu1  ;;  %v541_v62 = vadd.f32 %v540_v5, %v239_v9  ;;  %v65_v9 = vld [vmem:[#allocation5] sm:$0xff] }
  0xda   :  { %v1723_v25 = vmul.f32 -1.442695, %v528_v1 }
  0xdb   :  { %v1795_v28 = vpop.eup %1794 }
  0xdc   :  { %v1797_v63 = vpop.eup %1796  ;;  %v553_v0 = vadd.f32 1.0, %v1795_v28  ;;  %1798 = vpow2.f32 %v1723_v25 }
  0xdd   :  { %v554_v37 = vadd.f32 1.0, %v1797_v63 }
  0xde   :  { %1800 = vrcp.f32 %v553_v0  ;;  %v567_v28 = vand.u32 2147483648, %v553_v0  ;;  %v565_v2 = vand.u32 2147483647, %v553_v0  ;;  %vm561_vm3 = vweird.f32 %v553_v0 }
  0xdf   :  { %1802 = vrcp.f32 %v554_v37  ;;  %v529_v58 = vpop.f32.mrf.mxu2  ;;  %v542_v27 = vpop.f32.mrf.mxu3  ;;  %v582_v63 = vand.u32 2147483648, %v554_v37  ;;  %v580_v25 = vand.u32 2147483647, %v554_v37  ;;  %vm576_vm4 = vweird.f32 %v554_v37 }
  0xe0   :  { %v568_v5 = vor.u32 1.1754944e-38, %v567_v28  ;;  %vm566_vm7 = vcmp.eq.f32.partialorder %v565_v2, 8.507059e+37 }
  0xe1   :  { %vm581_vm8 = vcmp.eq.f32.partialorder %v580_v25, 8.507059e+37 }
  0xe2   :  { %v1799_v51 = vpop.eup %1798 }
  0xe3   :  { %v555_v24 = vadd.f32 1.0, %v1799_v51  ;;  %v583_v51 = vor.u32 1.1754944e-38, %v582_v63 }
  0xe4   :  { %v1801_v49 = vpop.eup %1800 }
  0xe5   :  { %v1803_v4 = vpop.eup %1802  ;;  %v557_v14 = vmul.f32 %v1801_v49, %v553_v0  ;;  %1804 = vrcp.f32 %v555_v24  ;;  %vm562_vm1 = vweird.f32 %v1801_v49  ;;  %v597_v28 = vand.u32 2147483648, %v555_v24 }
  0xe6   :  { %v572_v45 = vmul.f32 %v1803_v4, %v554_v37  ;;  %1806 = vtanh.f32 %v541_v62  ;;  %vm577_vm2 = vweird.f32 %v1803_v4  ;;  %vm563_vm5 = vmor %vm561_vm3, %vm562_vm1  ;;  %vm591_vm10 = vweird.f32 %v555_v24 }
  0xe7   :  { %v558_v52 = vsub.f32 1.0, %v557_v14  ;;  %vm578_vm6 = vmor %vm576_vm4, %vm577_vm2  ;;  %v595_v63 = vand.u32 2147483647, %v555_v24  ;;  %v598_v2 = vor.u32 1.1754944e-38, %v597_v28 }
  0xe8   :  { %v573_v12 = vsub.f32 1.0, %v572_v45 }
  0xe9   :  { %v559_v1 = vmul.f32 %v1801_v49, %v558_v52  ;;  %vm596_vm12 = vcmp.eq.f32.partialorder %v595_v63, 8.507059e+37 }
  0xea   :  { %v574_v10 = vmul.f32 %v1803_v4, %v573_v12 }
  0xeb   :  { %v1805_v58 = vpop.eup %1804  ;;  %v560_v11 = vadd.f32 %v1801_v49, %v559_v1 }
  0xec   :  { %v587_v19 = vmul.f32 %v1805_v58, %v555_v24  ;;  %v575_v27 = vadd.f32 %v1803_v4, %v574_v10  ;;  %v1807_v62 = vpop.eup %1806  ;;  %vm592_vm9 = vweird.f32 %v1805_v58 }
  0xed   :  { %v564_v14 = vsel %vm563_vm5, %v1801_v49, %v560_v11  ;;  %vm593_vm11 = vmor %vm591_vm10, %vm592_vm9 }
  0xee   :  { %v588_v45 = vsub.f32 1.0, %v587_v19  ;;  %v569_v52 = vsel %vm566_vm7, %v568_v5, %v564_v14  ;;  %v579_v41 = vsel %vm578_vm6, %v1803_v4, %v575_v27 }
  0xef   :  { %v584_v12 = vsel %vm581_vm8, %v583_v51, %v579_v41  ;;  %v603_v50 = vmul.f32 %v1807_v62, %v569_v52 }
  0xf0   :  { %v589_v44 = vmul.f32 %v1805_v58, %v588_v45  ;;  %v602_v1 = vmul.f32 %v584_v12, %v65_v9 }
  0xf2   :  { %v2400_v0 = vadd.f32 %v603_v50, %v602_v1  ;;  %v590_v37 = vadd.f32 %v1805_v58, %v589_v44 }
  0xf4   :  { %1808 = vtanh.f32 %v2400_v0  ;;  %v594_v49 = vsel %vm593_vm11, %v1805_v58, %v590_v37 }
  0xf5   :  { %v599_v4 = vsel %vm596_vm12, %v598_v2, %v594_v49 }
  0xfa   :  { %v1809_v10 = vpop.eup %1808 }
  0xfb   :  { %v606_v25 = vmul.f32 %v1809_v10, %v599_v4 }
  0xfd   :  { %607 = vst [vmem:[#allocation10] sm:$0xff] %v606_v25  ;;  %v608_v41 = vpack.c.bf16 %v606_v25, %v606_v25 }
  0xff   :  { %624 = vmatmul.bf16.vlgmr.msra.gmra.mxu0 %v608_v41  ;;  %637 = vmatmul.bf16.vlgmr.msra.gmra.mxu1 %v608_v41 }
 0x100   :  { %650 = vmatmul.bf16.vlgmr.msra.gmra.mxu2 %v608_v41  ;;  %663 = vmatmul.bf16.vlgmr.msra.gmra.mxu3 %v608_v41 }
 0x101   :  { %866 = vmatpush.bf16.msra.mxu0 %v2137_v16  ;;  %879 = vmatpush.bf16.msra.mxu1 %v2139_v20 }
 0x102   :  { %892 = vmatpush.bf16.msra.mxu2 %v2141_v21  ;;  %905 = vmatpush.bf16.msra.mxu3 %v2150_v31 }
 0x105   :  { %867 = vmatpush.bf16.msra.mxu0 %v2148_v30  ;;  %880 = vmatpush.bf16.msra.mxu1 %v2154_v34 }
 0x106   :  { %893 = vmatpush.bf16.msra.mxu2 %v2156_v35  ;;  %906 = vmatpush.bf16.msra.mxu3 %v2159_v42 }
 0x109   :  { %868 = vmatpush.bf16.msra.mxu0 %v2162_v43  ;;  %881 = vmatpush.bf16.msra.mxu1 %v2166_v46 }
 0x10a   :  { %894 = vmatpush.bf16.msra.mxu2 %v2168_v47  ;;  %907 = vmatpush.bf16.msra.mxu3 %v2171_v54 }
 0x10d   :  { %869 = vmatpush.bf16.msra.mxu0 %v2177_v57  ;;  %882 = vmatpush.bf16.msra.mxu1 %v2181_v59 }
 0x10e   :  { %895 = vmatpush.bf16.msra.mxu2 %v2183_v60  ;;  %908 = vmatpush.bf16.msra.mxu3 %v2186_v3 }
 0x111   :  { %870 = vmatpush.bf16.msra.mxu0 %v2189_v6  ;;  %883 = vmatpush.bf16.msra.mxu1 %v2193_v7 }
 0x112   :  { %896 = vmatpush.bf16.msra.mxu2 %v2195_v8  ;;  %909 = vmatpush.bf16.msra.mxu3 %v2199_v15 }
 0x115   :  { %871 = vmatpush.bf16.msra.mxu0 %v2205_v17  ;;  %884 = vmatpush.bf16.msra.mxu1 %v2209_v22 }
 0x116   :  { %897 = vmatpush.bf16.msra.mxu2 %v2211_v23  ;;  %910 = vmatpush.bf16.msra.mxu3 %v2214_v32 }
 0x119   :  { %872 = vmatpush.bf16.msra.mxu0 %v2217_v33  ;;  %885 = vmatpush.bf16.msra.mxu1 %v2221_v38 }
 0x11a   :  { %898 = vmatpush.bf16.msra.mxu2 %v2223_v39  ;;  %911 = vmatpush.bf16.msra.mxu3 %v2226_v48 }
 0x11d   :  { %873 = vmatpush.bf16.msra.mxu0 %v2229_v53  ;;  %886 = vmatpush.bf16.msra.mxu1 %v2233_v55 }
 0x11e   :  { %899 = vmatpush.bf16.msra.mxu2 %v2235_v56  ;;  %912 = vmatpush.bf16.msra.mxu3 %v2241_v61 }
 0x17c   :  { %v625_v44 = vpop.f32.mrf.mxu0  ;;  %v638_v50 = vpop.f32.mrf.mxu1 }
 0x17d   :  { %v626_v24 = vadd.f32 %v625_v44, %v2332_v13  ;;  %v639_v58 = vadd.f32 %v638_v50, %v2334_v18 }
 0x17f   :  { %v1724_v11 = vmul.f32 -1.442695, %v626_v24  ;;  %v1725_v19 = vmul.f32 -1.442695, %v639_v58 }
 0x181   :  { %1810 = vpow2.f32 %v1724_v11 }
 0x182   :  { %1812 = vpow2.f32 %v1725_v19 }
 0x183   :  { %v651_v5 = vpop.f32.mrf.mxu2  ;;  %v664_v27 = vpop.f32.mrf.mxu3 }
 0x184   :  { %v652_v51 = vadd.f32 %v651_v5, %v2338_v26  ;;  %v627_v9 = vpop.f32.mrf.mxu0  ;;  %v640_v14 = vpop.f32.mrf.mxu1  ;;  %v665_v49 = vadd.f32 %v664_v27, %v2341_v29 }
 0x186   :  { %v1726_v62 = vmul.f32 -1.442695, %v652_v51 }
 0x187   :  { %v1811_v45 = vpop.eup %1810 }
 0x188   :  { %v1813_v52 = vpop.eup %1812  ;;  %v677_v12 = vadd.f32 1.0, %v1811_v45  ;;  %1814 = vpow2.f32 %v1726_v62 }
 0x189   :  { %v678_v1 = vadd.f32 1.0, %v1813_v52 }
 0x18a   :  { %1816 = vrcp.f32 %v677_v12  ;;  %v691_v41 = vand.u32 2147483648, %v677_v12  ;;  %v689_v24 = vand.u32 2147483647, %v677_v12  ;;  %vm685_vm15 = vweird.f32 %v677_v12 }
 0x18b   :  { %1818 = vrcp.f32 %v678_v1  ;;  %v653_v13 = vpop.f32.mrf.mxu2  ;;  %v666_v18 = vpop.f32.mrf.mxu3  ;;  %v706_v44 = vand.u32 2147483648, %v678_v1  ;;  %v704_v11 = vand.u32 2147483647, %v678_v1  ;;  %vm700_vm0 = vweird.f32 %v678_v1 }
 0x18c   :  { %v692_v27 = vor.u32 1.1754944e-38, %v691_v41  ;;  %vm690_vm3 = vcmp.eq.f32.partialorder %v689_v24, 8.507059e+37 }
 0x18d   :  { %v707_v9 = vor.u32 1.1754944e-38, %v706_v44  ;;  %vm705_vm4 = vcmp.eq.f32.partialorder %v704_v11, 8.507059e+37 }
 0x18e   :  { %v1815_v37 = vpop.eup %1814 }
 0x18f   :  { %v679_v28 = vadd.f32 1.0, %v1815_v37 }
 0x190   :  { %v1817_v63 = vpop.eup %1816 }
 0x191   :  { %v1819_v2 = vpop.eup %1818  ;;  %v681_v10 = vmul.f32 %v1817_v63, %v677_v12  ;;  %1820 = vrcp.f32 %v679_v28  ;;  %vm686_vm13 = vweird.f32 %v1817_v63  ;;  %vm715_vm6 = vweird.f32 %v679_v28 }
 0x192   :  { %v696_v26 = vmul.f32 %v1819_v2, %v678_v1  ;;  %1822 = vtanh.f32 %v665_v49  ;;  %vm701_vm14 = vweird.f32 %v1819_v2  ;;  %vm687_vm1 = vmor %vm685_vm15, %vm686_vm13 }
 0x193   :  { %v682_v4 = vsub.f32 1.0, %v681_v10  ;;  %vm702_vm2 = vmor %vm700_vm0, %vm701_vm14 }
 0x194   :  { %v697_v25 = vsub.f32 1.0, %v696_v26  ;;  %v721_v26 = vand.u32 2147483648, %v679_v28 }
 0x195   :  { %v683_v50 = vmul.f32 %v1817_v63, %v682_v4 }
 0x196   :  { %v698_v58 = vmul.f32 %v1819_v2, %v697_v25  ;;  %v722_v25 = vor.u32 1.1754944e-38, %v721_v26 }
 0x197   :  { %v1821_v19 = vpop.eup %1820  ;;  %v684_v5 = vadd.f32 %v1817_v63, %v683_v50 }
 0x198   :  { %v711_v29 = vmul.f32 %v1821_v19, %v679_v28  ;;  %v699_v51 = vadd.f32 %v1819_v2, %v698_v58  ;;  %v1823_v62 = vpop.eup %1822  ;;  %vm716_vm5 = vweird.f32 %v1821_v19 }
 0x199   :  { %v688_v14 = vsel %vm687_vm1, %v1817_v63, %v684_v5  ;;  %v719_v63 = vand.u32 2147483647, %v679_v28  ;;  %vm717_vm7 = vmor %vm715_vm6, %vm716_vm5 }
 0x19a   :  { %v712_v45 = vsub.f32 1.0, %v711_v29  ;;  %v693_v52 = vsel %vm690_vm3, %v692_v27, %v688_v14  ;;  %v703_v13 = vsel %vm702_vm2, %v1819_v2, %v699_v51  ;;  %v2656_v27 = vld [vmem:[#allocation18_spill] sm:$0xff] }
 0x19b   :  { %v708_v18 = vsel %vm705_vm4, %v707_v9, %v703_v13  ;;  %v727_v37 = vmul.f32 %v1823_v62, %v693_v52  ;;  %vm720_vm8 = vcmp.eq.f32.partialorder %v719_v63, 8.507059e+37 }
 0x19c   :  { %v713_v49 = vmul.f32 %v1821_v19, %v712_v45  ;;  %v726_v10 = vmul.f32 %v708_v18, %v2400_v0 }
 0x19e   :  { %v2440_v12 = vadd.f32 %v727_v37, %v726_v10  ;;  %v714_v1 = vadd.f32 %v1821_v19, %v713_v49 }
 0x1a0   :  { %1824 = vtanh.f32 %v2440_v12  ;;  %v718_v4 = vsel %vm717_vm7, %v1821_v19, %v714_v1  ;;  %v2657_v1 = vld [vmem:[#allocation19_spill] sm:$0xff] }
 0x1a1   :  { %v723_v41 = vsel %vm720_vm8, %v722_v25, %v718_v4 }
 0x1a6   :  { %v1825_v2 = vpop.eup %1824 }
 0x1a7   :  { %v730_v44 = vmul.f32 %v1825_v2, %v723_v41 }
 0x1a9   :  { %732 = vst [vmem:[#allocation10 + $0x8] sm:$0xff] %v730_v44  ;;  %v733_v50 = vpack.c.bf16 %v730_v44, %v730_v44 }
 0x1ab   :  { %749 = vmatmul.bf16.vlgmr.msrb.gmra.mxu0 %v733_v50  ;;  %762 = vmatmul.bf16.vlgmr.msrb.gmra.mxu1 %v733_v50 }
 0x1ac   :  { %775 = vmatmul.bf16.vlgmr.msrb.gmra.mxu2 %v733_v50  ;;  %788 = vmatmul.bf16.vlgmr.msrb.gmra.mxu3 %v733_v50 }
 0x1ad   :  { %991 = vmatpush.bf16.msrb.mxu0 %v2137_v16  ;;  %1004 = vmatpush.bf16.msrb.mxu1 %v2139_v20 }
 0x1ae   :  { %1017 = vmatpush.bf16.msrb.mxu2 %v2141_v21  ;;  %1030 = vmatpush.bf16.msrb.mxu3 %v2150_v31 }
 0x1b1   :  { %992 = vmatpush.bf16.msrb.mxu0 %v2148_v30  ;;  %1005 = vmatpush.bf16.msrb.mxu1 %v2154_v34 }
 0x1b2   :  { %1018 = vmatpush.bf16.msrb.mxu2 %v2156_v35  ;;  %1031 = vmatpush.bf16.msrb.mxu3 %v2159_v42 }
 0x1b5   :  { %993 = vmatpush.bf16.msrb.mxu0 %v2162_v43  ;;  %1006 = vmatpush.bf16.msrb.mxu1 %v2166_v46 }
 0x1b6   :  { %1019 = vmatpush.bf16.msrb.mxu2 %v2168_v47  ;;  %1032 = vmatpush.bf16.msrb.mxu3 %v2171_v54 }
 0x1b9   :  { %994 = vmatpush.bf16.msrb.mxu0 %v2177_v57  ;;  %1007 = vmatpush.bf16.msrb.mxu1 %v2181_v59 }
 0x1ba   :  { %1020 = vmatpush.bf16.msrb.mxu2 %v2183_v60  ;;  %1033 = vmatpush.bf16.msrb.mxu3 %v2186_v3 }
 0x1bd   :  { %995 = vmatpush.bf16.msrb.mxu0 %v2189_v6  ;;  %1008 = vmatpush.bf16.msrb.mxu1 %v2193_v7 }
 0x1be   :  { %1021 = vmatpush.bf16.msrb.mxu2 %v2195_v8  ;;  %1034 = vmatpush.bf16.msrb.mxu3 %v2199_v15 }
 0x1c1   :  { %996 = vmatpush.bf16.msrb.mxu0 %v2205_v17  ;;  %1009 = vmatpush.bf16.msrb.mxu1 %v2209_v22 }
 0x1c2   :  { %1022 = vmatpush.bf16.msrb.mxu2 %v2211_v23  ;;  %1035 = vmatpush.bf16.msrb.mxu3 %v2214_v32 }
 0x1c5   :  { %997 = vmatpush.bf16.msrb.mxu0 %v2217_v33  ;;  %1010 = vmatpush.bf16.msrb.mxu1 %v2221_v38 }
 0x1c6   :  { %1023 = vmatpush.bf16.msrb.mxu2 %v2223_v39  ;;  %1036 = vmatpush.bf16.msrb.mxu3 %v2226_v48 }
 0x1c9   :  { %998 = vmatpush.bf16.msrb.mxu0 %v2229_v53  ;;  %1011 = vmatpush.bf16.msrb.mxu1 %v2233_v55 }
 0x1ca   :  { %1024 = vmatpush.bf16.msrb.mxu2 %v2235_v56  ;;  %1037 = vmatpush.bf16.msrb.mxu3 %v2241_v61 }
 0x228   :  { %v750_v0 = vpop.f32.mrf.mxu0  ;;  %v763_v28 = vpop.f32.mrf.mxu1 }
 0x229   :  { %v751_v24 = vadd.f32 %v750_v0, %v2343_v36  ;;  %v764_v58 = vadd.f32 %v763_v28, %v2345_v40 }
 0x22b   :  { %v1727_v11 = vmul.f32 -1.442695, %v751_v24  ;;  %v1728_v19 = vmul.f32 -1.442695, %v764_v58 }
 0x22d   :  { %1826 = vpow2.f32 %v1727_v11 }
 0x22e   :  { %1828 = vpow2.f32 %v1728_v19 }
 0x22f   :  { %v776_v5 = vpop.f32.mrf.mxu2  ;;  %v789_v29 = vpop.f32.mrf.mxu3 }
 0x230   :  { %v777_v51 = vadd.f32 %v776_v5, %v2656_v27  ;;  %v752_v9 = vpop.f32.mrf.mxu0  ;;  %v765_v14 = vpop.f32.mrf.mxu1  ;;  %v790_v26 = vadd.f32 %v789_v29, %v2657_v1 }
 0x232   :  { %v1729_v62 = vmul.f32 -1.442695, %v777_v51 }
 0x233   :  { %v1827_v45 = vpop.eup %1826 }
 0x234   :  { %v1829_v52 = vpop.eup %1828  ;;  %v802_v13 = vadd.f32 1.0, %v1827_v45  ;;  %1830 = vpow2.f32 %v1729_v62 }
 0x235   :  { %v803_v18 = vadd.f32 1.0, %v1829_v52 }
 0x236   :  { %1832 = vrcp.f32 %v802_v13  ;;  %v816_v44 = vand.u32 2147483648, %v802_v13  ;;  %v814_v28 = vand.u32 2147483647, %v802_v13  ;;  %vm810_vm11 = vweird.f32 %v802_v13 }
 0x237   :  { %1834 = vrcp.f32 %v803_v18  ;;  %v778_v36 = vpop.f32.mrf.mxu2  ;;  %v791_v40 = vpop.f32.mrf.mxu3  ;;  %v831_v50 = vand.u32 2147483648, %v803_v18  ;;  %v829_v58 = vand.u32 2147483647, %v803_v18  ;;  %vm825_vm12 = vweird.f32 %v803_v18 }
 0x238   :  { %v817_v29 = vor.u32 1.1754944e-38, %v816_v44  ;;  %vm815_vm15 = vcmp.eq.f32.partialorder %v814_v28, 8.507059e+37  ;;  %v2659_v28 = vld [vmem:[#allocation21_spill] sm:$0xff] }
 0x239   :  { %v832_v51 = vor.u32 1.1754944e-38, %v831_v50  ;;  %vm830_vm0 = vcmp.eq.f32.partialorder %v829_v58, 8.507059e+37  ;;  %v2658_v50 = vld [vmem:[#allocation20_spill] sm:$0xff] }
 0x23a   :  { %v1831_v37 = vpop.eup %1830 }
 0x23b   :  { %v804_v49 = vadd.f32 1.0, %v1831_v37 }
 0x23c   :  { %v1833_v10 = vpop.eup %1832 }
 0x23d   :  { %v1835_v63 = vpop.eup %1834  ;;  %v806_v4 = vmul.f32 %v1833_v10, %v802_v13  ;;  %1836 = vrcp.f32 %v804_v49  ;;  %vm811_vm9 = vweird.f32 %v1833_v10  ;;  %vm840_vm2 = vweird.f32 %v804_v49 }
 0x23e   :  { %v821_v25 = vmul.f32 %v1835_v63, %v803_v18  ;;  %1838 = vtanh.f32 %v790_v26  ;;  %vm826_vm10 = vweird.f32 %v1835_v63  ;;  %vm812_vm13 = vmor %vm810_vm11, %vm811_vm9  ;;  %v846_v26 = vand.u32 2147483648, %v804_v49 }
 0x23f   :  { %v807_v2 = vsub.f32 1.0, %v806_v4  ;;  %vm827_vm14 = vmor %vm825_vm12, %vm826_vm10 }
 0x240   :  { %v822_v41 = vsub.f32 1.0, %v821_v25  ;;  %v847_v25 = vor.u32 1.1754944e-38, %v846_v26 }
 0x241   :  { %v808_v0 = vmul.f32 %v1833_v10, %v807_v2 }
 0x242   :  { %v823_v24 = vmul.f32 %v1835_v63, %v822_v41 }
 0x243   :  { %v1837_v11 = vpop.eup %1836  ;;  %v809_v19 = vadd.f32 %v1833_v10, %v808_v0 }
 0x244   :  { %v836_v5 = vmul.f32 %v1837_v11, %v804_v49  ;;  %v824_v27 = vadd.f32 %v1835_v63, %v823_v24  ;;  %v1839_v14 = vpop.eup %1838  ;;  %vm841_vm1 = vweird.f32 %v1837_v11 }
 0x245   :  { %v813_v9 = vsel %vm812_vm13, %v1833_v10, %v809_v19  ;;  %v844_v10 = vand.u32 2147483647, %v804_v49  ;;  %vm842_vm3 = vmor %vm840_vm2, %vm841_vm1 }
 0x246   :  { %v837_v62 = vsub.f32 1.0, %v836_v5  ;;  %v818_v45 = vsel %vm815_vm15, %v817_v29, %v813_v9  ;;  %v828_v52 = vsel %vm827_vm14, %v1835_v63, %v824_v27  ;;  %v2660_v29 = vld [vmem:[#allocation22_spill] sm:$0xff] }
 0x247   :  { %v833_v36 = vsel %vm830_vm0, %v832_v51, %v828_v52  ;;  %v852_v40 = vmul.f32 %v1839_v14, %v818_v45  ;;  %vm845_vm4 = vcmp.eq.f32.partialorder %v844_v10, 8.507059e+37  ;;  %v2661_v10 = vld [vmem:[#allocation23_spill] sm:$0xff] }
 0x248   :  { %v838_v37 = vmul.f32 %v1837_v11, %v837_v62  ;;  %v851_v1 = vmul.f32 %v833_v36, %v2440_v12 }
 0x24a   :  { %v2480_v13 = vadd.f32 %v852_v40, %v851_v1  ;;  %v839_v18 = vadd.f32 %v1837_v11, %v838_v37 }
 0x24c   :  { %1840 = vtanh.f32 %v2480_v13  ;;  %v843_v4 = vsel %vm842_vm3, %v1837_v11, %v839_v18 }
 0x24d   :  { %v848_v2 = vsel %vm845_vm4, %v847_v25, %v843_v4 }
 0x252   :  { %v1841_v63 = vpop.eup %1840 }
 0x253   :  { %v855_v41 = vmul.f32 %v1841_v63, %v848_v2 }
 0x255   :  { %857 = vst [vmem:[#allocation10 + $0x10] sm:$0xff] %v855_v41  ;;  %v858_v44 = vpack.c.bf16 %v855_v41, %v855_v41 }
 0x257   :  { %874 = vmatmul.bf16.vlgmr.msra.gmra.mxu0 %v858_v44  ;;  %887 = vmatmul.bf16.vlgmr.msra.gmra.mxu1 %v858_v44 }
 0x258   :  { %900 = vmatmul.bf16.vlgmr.msra.gmra.mxu2 %v858_v44  ;;  %913 = vmatmul.bf16.vlgmr.msra.gmra.mxu3 %v858_v44 }
 0x259   :  { %1116 = vmatpush.bf16.msra.mxu0 %v2137_v16  ;;  %1129 = vmatpush.bf16.msra.mxu1 %v2139_v20 }
 0x25a   :  { %1142 = vmatpush.bf16.msra.mxu2 %v2141_v21  ;;  %1155 = vmatpush.bf16.msra.mxu3 %v2150_v31 }
 0x25d   :  { %1117 = vmatpush.bf16.msra.mxu0 %v2148_v30  ;;  %1130 = vmatpush.bf16.msra.mxu1 %v2154_v34 }
 0x25e   :  { %1143 = vmatpush.bf16.msra.mxu2 %v2156_v35  ;;  %1156 = vmatpush.bf16.msra.mxu3 %v2159_v42 }
 0x261   :  { %1118 = vmatpush.bf16.msra.mxu0 %v2162_v43  ;;  %1131 = vmatpush.bf16.msra.mxu1 %v2166_v46 }
 0x262   :  { %1144 = vmatpush.bf16.msra.mxu2 %v2168_v47  ;;  %1157 = vmatpush.bf16.msra.mxu3 %v2171_v54 }
 0x265   :  { %1119 = vmatpush.bf16.msra.mxu0 %v2177_v57  ;;  %1132 = vmatpush.bf16.msra.mxu1 %v2181_v59 }
 0x266   :  { %1145 = vmatpush.bf16.msra.mxu2 %v2183_v60  ;;  %1158 = vmatpush.bf16.msra.mxu3 %v2186_v3 }
 0x269   :  { %1120 = vmatpush.bf16.msra.mxu0 %v2189_v6  ;;  %1133 = vmatpush.bf16.msra.mxu1 %v2193_v7 }
 0x26a   :  { %1146 = vmatpush.bf16.msra.mxu2 %v2195_v8  ;;  %1159 = vmatpush.bf16.msra.mxu3 %v2199_v15 }
 0x26d   :  { %1121 = vmatpush.bf16.msra.mxu0 %v2205_v17  ;;  %1134 = vmatpush.bf16.msra.mxu1 %v2209_v22 }
 0x26e   :  { %1147 = vmatpush.bf16.msra.mxu2 %v2211_v23  ;;  %1160 = vmatpush.bf16.msra.mxu3 %v2214_v32 }
 0x271   :  { %1122 = vmatpush.bf16.msra.mxu0 %v2217_v33  ;;  %1135 = vmatpush.bf16.msra.mxu1 %v2221_v38 }
 0x272   :  { %1148 = vmatpush.bf16.msra.mxu2 %v2223_v39  ;;  %1161 = vmatpush.bf16.msra.mxu3 %v2226_v48 }
 0x275   :  { %1123 = vmatpush.bf16.msra.mxu0 %v2229_v53  ;;  %1136 = vmatpush.bf16.msra.mxu1 %v2233_v55 }
 0x276   :  { %1149 = vmatpush.bf16.msra.mxu2 %v2235_v56  ;;  %1162 = vmatpush.bf16.msra.mxu3 %v2241_v61 }
 0x2d4   :  { %v875_v12 = vpop.f32.mrf.mxu0  ;;  %v888_v49 = vpop.f32.mrf.mxu1 }
 0x2d5   :  { %v876_v0 = vadd.f32 %v875_v12, %v2658_v50  ;;  %v889_v24 = vadd.f32 %v888_v49, %v2659_v28 }
 0x2d7   :  { %v1730_v58 = vmul.f32 -1.442695, %v876_v0  ;;  %v1731_v11 = vmul.f32 -1.442695, %v889_v24 }
 0x2d9   :  { %1842 = vpow2.f32 %v1730_v58 }
 0x2da   :  { %1844 = vpow2.f32 %v1731_v11 }
 0x2db   :  { %v901_v19 = vpop.f32.mrf.mxu2  ;;  %v914_v5 = vpop.f32.mrf.mxu3 }
 0x2dc   :  { %v902_v27 = vadd.f32 %v901_v19, %v2660_v29  ;;  %v877_v51 = vpop.f32.mrf.mxu0  ;;  %v890_v9 = vpop.f32.mrf.mxu1  ;;  %v915_v4 = vadd.f32 %v914_v5, %v2661_v10 }
 0x2de   :  { %v1732_v14 = vmul.f32 -1.442695, %v902_v27 }
 0x2df   :  { %v1843_v62 = vpop.eup %1842 }
 0x2e0   :  { %v1845_v45 = vpop.eup %1844  ;;  %v927_v52 = vadd.f32 1.0, %v1843_v62  ;;  %1846 = vpow2.f32 %v1732_v14 }
 0x2e1   :  { %v928_v36 = vadd.f32 1.0, %v1845_v45 }
 0x2e2   :  { %1848 = vrcp.f32 %v927_v52  ;;  %v941_v12 = vand.u32 2147483648, %v927_v52  ;;  %v939_v0 = vand.u32 2147483647, %v927_v52  ;;  %vm935_vm7 = vweird.f32 %v927_v52 }
 0x2e3   :  { %1850 = vrcp.f32 %v928_v36  ;;  %v903_v40 = vpop.f32.mrf.mxu2  ;;  %v916_v37 = vpop.f32.mrf.mxu3  ;;  %v956_v49 = vand.u32 2147483648, %v928_v36  ;;  %v954_v24 = vand.u32 2147483647, %v928_v36  ;;  %vm950_vm8 = vweird.f32 %v928_v36 }
 0x2e4   :  { %v942_v5 = vor.u32 1.1754944e-38, %v941_v12  ;;  %vm940_vm11 = vcmp.eq.f32.partialorder %v939_v0, 8.507059e+37  ;;  %v2663_v0 = vld [vmem:[#allocation25_spill] sm:$0xff] }
 0x2e5   :  { %v957_v27 = vor.u32 1.1754944e-38, %v956_v49  ;;  %vm955_vm12 = vcmp.eq.f32.partialorder %v954_v24, 8.507059e+37  ;;  %v2662_v49 = vld [vmem:[#allocation24_spill] sm:$0xff] }
 0x2e6   :  { %v1847_v1 = vpop.eup %1846 }
 0x2e7   :  { %v929_v18 = vadd.f32 1.0, %v1847_v1 }
 0x2e8   :  { %v1849_v26 = vpop.eup %1848 }
 0x2e9   :  { %v1851_v25 = vpop.eup %1850  ;;  %v931_v63 = vmul.f32 %v1849_v26, %v927_v52  ;;  %1852 = vrcp.f32 %v929_v18  ;;  %vm936_vm5 = vweird.f32 %v1849_v26  ;;  %vm965_vm14 = vweird.f32 %v929_v18 }
 0x2ea   :  { %v946_v2 = vmul.f32 %v1851_v25, %v928_v36  ;;  %1854 = vtanh.f32 %v915_v4  ;;  %vm951_vm6 = vweird.f32 %v1851_v25  ;;  %vm937_vm9 = vmor %vm935_vm7, %vm936_vm5  ;;  %v971_v4 = vand.u32 2147483648, %v929_v18 }
 0x2eb   :  { %v932_v41 = vsub.f32 1.0, %v931_v63  ;;  %vm952_vm10 = vmor %vm950_vm8, %vm951_vm6 }
 0x2ec   :  { %v947_v44 = vsub.f32 1.0, %v946_v2  ;;  %v972_v2 = vor.u32 1.1754944e-38, %v971_v4 }
 0x2ed   :  { %v933_v50 = vmul.f32 %v1849_v26, %v932_v41 }
 0x2ee   :  { %v948_v28 = vmul.f32 %v1851_v25, %v947_v44 }
 0x2ef   :  { %v1853_v58 = vpop.eup %1852  ;;  %v934_v11 = vadd.f32 %v1849_v26, %v933_v50 }
 0x2f0   :  { %v961_v19 = vmul.f32 %v1853_v58, %v929_v18  ;;  %v949_v29 = vadd.f32 %v1851_v25, %v948_v28  ;;  %v1855_v9 = vpop.eup %1854  ;;  %vm966_vm13 = vweird.f32 %v1853_v58 }
 0x2f1   :  { %v938_v51 = vsel %vm937_vm9, %v1849_v26, %v934_v11  ;;  %v969_v26 = vand.u32 2147483647, %v929_v18  ;;  %vm967_vm15 = vmor %vm965_vm14, %vm966_vm13 }
 0x2f2   :  { %v962_v14 = vsub.f32 1.0, %v961_v19  ;;  %v943_v62 = vsel %vm940_vm11, %v942_v5, %v938_v51  ;;  %v953_v45 = vsel %vm952_vm10, %v1851_v25, %v949_v29  ;;  %v2664_v5 = vld [vmem:[#allocation26_spill] sm:$0xff] }
 0x2f3   :  { %v958_v40 = vsel %vm955_vm12, %v957_v27, %v953_v45  ;;  %v977_v37 = vmul.f32 %v1855_v9, %v943_v62  ;;  %vm970_vm0 = vcmp.eq.f32.partialorder %v969_v26, 8.507059e+37  ;;  %v2665_v26 = vld [vmem:[#allocation27_spill] sm:$0xff] }
 0x2f4   :  { %v963_v1 = vmul.f32 %v1853_v58, %v962_v14  ;;  %v976_v10 = vmul.f32 %v958_v40, %v2480_v13 }
 0x2f6   :  { %v2520_v52 = vadd.f32 %v977_v37, %v976_v10  ;;  %v964_v36 = vadd.f32 %v1853_v58, %v963_v1 }
 0x2f8   :  { %1856 = vtanh.f32 %v2520_v52  ;;  %v968_v63 = vsel %vm967_vm15, %v1853_v58, %v964_v36 }
 0x2f9   :  { %v973_v41 = vsel %vm970_vm0, %v972_v2, %v968_v63 }
 0x2fe   :  { %v1857_v25 = vpop.eup %1856 }
 0x2ff   :  { %v980_v44 = vmul.f32 %v1857_v25, %v973_v41 }
 0x301   :  { %982 = vst [vmem:[#allocation10 + $0x18] sm:$0xff] %v980_v44  ;;  %v983_v12 = vpack.c.bf16 %v980_v44, %v980_v44 }
 0x303   :  { %999 = vmatmul.bf16.vlgmr.msrb.gmra.mxu0 %v983_v12  ;;  %1012 = vmatmul.bf16.vlgmr.msrb.gmra.mxu1 %v983_v12 }
 0x304   :  { %1025 = vmatmul.bf16.vlgmr.msrb.gmra.mxu2 %v983_v12  ;;  %1038 = vmatmul.bf16.vlgmr.msrb.gmra.mxu3 %v983_v12 }
 0x305   :  { %1241 = vmatpush.bf16.msrb.mxu0 %v2137_v16  ;;  %1254 = vmatpush.bf16.msrb.mxu1 %v2139_v20 }
 0x306   :  { %1267 = vmatpush.bf16.msrb.mxu2 %v2141_v21  ;;  %1280 = vmatpush.bf16.msrb.mxu3 %v2150_v31 }
 0x309   :  { %1242 = vmatpush.bf16.msrb.mxu0 %v2148_v30  ;;  %1255 = vmatpush.bf16.msrb.mxu1 %v2154_v34 }
 0x30a   :  { %1268 = vmatpush.bf16.msrb.mxu2 %v2156_v35  ;;  %1281 = vmatpush.bf16.msrb.mxu3 %v2159_v42 }
 0x30d   :  { %1243 = vmatpush.bf16.msrb.mxu0 %v2162_v43  ;;  %1256 = vmatpush.bf16.msrb.mxu1 %v2166_v46 }
 0x30e   :  { %1269 = vmatpush.bf16.msrb.mxu2 %v2168_v47  ;;  %1282 = vmatpush.bf16.msrb.mxu3 %v2171_v54 }
 0x311   :  { %1244 = vmatpush.bf16.msrb.mxu0 %v2177_v57  ;;  %1257 = vmatpush.bf16.msrb.mxu1 %v2181_v59 }
 0x312   :  { %1270 = vmatpush.bf16.msrb.mxu2 %v2183_v60  ;;  %1283 = vmatpush.bf16.msrb.mxu3 %v2186_v3 }
 0x315   :  { %1245 = vmatpush.bf16.msrb.mxu0 %v2189_v6  ;;  %1258 = vmatpush.bf16.msrb.mxu1 %v2193_v7 }
 0x316   :  { %1271 = vmatpush.bf16.msrb.mxu2 %v2195_v8  ;;  %1284 = vmatpush.bf16.msrb.mxu3 %v2199_v15 }
 0x319   :  { %1246 = vmatpush.bf16.msrb.mxu0 %v2205_v17  ;;  %1259 = vmatpush.bf16.msrb.mxu1 %v2209_v22 }
 0x31a   :  { %1272 = vmatpush.bf16.msrb.mxu2 %v2211_v23  ;;  %1285 = vmatpush.bf16.msrb.mxu3 %v2214_v32 }
 0x31d   :  { %1247 = vmatpush.bf16.msrb.mxu0 %v2217_v33  ;;  %1260 = vmatpush.bf16.msrb.mxu1 %v2221_v38 }
 0x31e   :  { %1273 = vmatpush.bf16.msrb.mxu2 %v2223_v39  ;;  %1286 = vmatpush.bf16.msrb.mxu3 %v2226_v48 }
 0x321   :  { %1248 = vmatpush.bf16.msrb.mxu0 %v2229_v53  ;;  %1261 = vmatpush.bf16.msrb.mxu1 %v2233_v55 }
 0x322   :  { %1274 = vmatpush.bf16.msrb.mxu2 %v2235_v56  ;;  %1287 = vmatpush.bf16.msrb.mxu3 %v2241_v61 }
 0x380   :  { %v1000_v13 = vpop.f32.mrf.mxu0  ;;  %v1013_v18 = vpop.f32.mrf.mxu1 }
 0x381   :  { %v1001_v50 = vadd.f32 %v1000_v13, %v2662_v49  ;;  %v1014_v28 = vadd.f32 %v1013_v18, %v2663_v0 }
 0x383   :  { %v1733_v24 = vmul.f32 -1.442695, %v1001_v50  ;;  %v1734_v58 = vmul.f32 -1.442695, %v1014_v28 }
 0x385   :  { %1858 = vpow2.f32 %v1733_v24 }
 0x386   :  { %1860 = vpow2.f32 %v1734_v58 }
 0x387   :  { %v1026_v11 = vpop.f32.mrf.mxu2  ;;  %v1039_v19 = vpop.f32.mrf.mxu3 }
 0x388   :  { %v1027_v29 = vadd.f32 %v1026_v11, %v2664_v5  ;;  %v1002_v27 = vpop.f32.mrf.mxu0  ;;  %v1015_v51 = vpop.f32.mrf.mxu1  ;;  %v1040_v63 = vadd.f32 %v1039_v19, %v2665_v26 }
 0x38a   :  { %v1735_v9 = vmul.f32 -1.442695, %v1027_v29 }
 0x38b   :  { %v1859_v14 = vpop.eup %1858 }
 0x38c   :  { %v1861_v62 = vpop.eup %1860  ;;  %v1052_v45 = vadd.f32 1.0, %v1859_v14  ;;  %1862 = vpow2.f32 %v1735_v9 }
 0x38d   :  { %v1053_v40 = vadd.f32 1.0, %v1861_v62 }
 0x38e   :  { %1864 = vrcp.f32 %v1052_v45  ;;  %v1066_v13 = vand.u32 2147483648, %v1052_v45  ;;  %v1064_v50 = vand.u32 2147483647, %v1052_v45  ;;  %vm1060_vm3 = vweird.f32 %v1052_v45 }
 0x38f   :  { %1866 = vrcp.f32 %v1053_v40  ;;  %v1028_v37 = vpop.f32.mrf.mxu2  ;;  %v1041_v1 = vpop.f32.mrf.mxu3  ;;  %v1081_v18 = vand.u32 2147483648, %v1053_v40  ;;  %v1079_v28 = vand.u32 2147483647, %v1053_v40  ;;  %vm1075_vm4 = vweird.f32 %v1053_v40 }
 0x390   :  { %v1067_v19 = vor.u32 1.1754944e-38, %v1066_v13  ;;  %vm1065_vm7 = vcmp.eq.f32.partialorder %v1064_v50, 8.507059e+37 }
 0x391   :  { %v1082_v29 = vor.u32 1.1754944e-38, %v1081_v18  ;;  %vm1080_vm8 = vcmp.eq.f32.partialorder %v1079_v28, 8.507059e+37 }
 0x392   :  { %v1863_v10 = vpop.eup %1862 }
 0x393   :  { %v1054_v36 = vadd.f32 1.0, %v1863_v10 }
 0x394   :  { %v1865_v4 = vpop.eup %1864 }
 0x395   :  { %v1867_v2 = vpop.eup %1866  ;;  %v1056_v25 = vmul.f32 %v1865_v4, %v1052_v45  ;;  %1868 = vrcp.f32 %v1054_v36  ;;  %vm1061_vm1 = vweird.f32 %v1865_v4  ;;  %vm1090_vm10 = vweird.f32 %v1054_v36 }
 0x396   :  { %v1071_v41 = vmul.f32 %v1867_v2, %v1053_v40  ;;  %1870 = vtanh.f32 %v1040_v63  ;;  %vm1076_vm2 = vweird.f32 %v1867_v2  ;;  %vm1062_vm5 = vmor %vm1060_vm3, %vm1061_vm1  ;;  %v1096_v63 = vand.u32 2147483648, %v1054_v36 }
 0x397   :  { %v1057_v44 = vsub.f32 1.0, %v1056_v25  ;;  %vm1077_vm6 = vmor %vm1075_vm4, %vm1076_vm2 }
 0x398   :  { %v1072_v12 = vsub.f32 1.0, %v1071_v41  ;;  %v1097_v41 = vor.u32 1.1754944e-38, %v1096_v63 }
 0x399   :  { %v1058_v49 = vmul.f32 %v1865_v4, %v1057_v44 }
 0x39a   :  { %v1073_v0 = vmul.f32 %v1867_v2, %v1072_v12 }
 0x39b   :  { %v1869_v24 = vpop.eup %1868  ;;  %v1059_v58 = vadd.f32 %v1865_v4, %v1058_v49 }
 0x39c   :  { %v1086_v11 = vmul.f32 %v1869_v24, %v1054_v36  ;;  %v1074_v5 = vadd.f32 %v1867_v2, %v1073_v0  ;;  %v1871_v51 = vpop.eup %1870  ;;  %vm1091_vm9 = vweird.f32 %v1869_v24 }
 0x39d   :  { %v1063_v27 = vsel %vm1062_vm5, %v1865_v4, %v1059_v58  ;;  %v1094_v4 = vand.u32 2147483647, %v1054_v36  ;;  %vm1092_vm11 = vmor %vm1090_vm10, %vm1091_vm9 }
 0x39e   :  { %v1087_v9 = vsub.f32 1.0, %v1086_v11  ;;  %v1068_v14 = vsel %vm1065_vm7, %v1067_v19, %v1063_v27  ;;  %v1078_v62 = vsel %vm1077_vm6, %v1867_v2, %v1074_v5 }
 0x39f   :  { %v1083_v37 = vsel %vm1080_vm8, %v1082_v29, %v1078_v62  ;;  %v1102_v1 = vmul.f32 %v1871_v51, %v1068_v14  ;;  %vm1095_vm12 = vcmp.eq.f32.partialorder %v1094_v4, 8.507059e+37 }
 0x3a0   :  { %v1088_v10 = vmul.f32 %v1869_v24, %v1087_v9  ;;  %v1101_v26 = vmul.f32 %v1083_v37, %v2520_v52 }
 0x3a2   :  { %v2560_v45 = vadd.f32 %v1102_v1, %v1101_v26  ;;  %v1089_v40 = vadd.f32 %v1869_v24, %v1088_v10 }
 0x3a4   :  { %1872 = vtanh.f32 %v2560_v45  ;;  %v1093_v25 = vsel %vm1092_vm11, %v1869_v24, %v1089_v40 }
 0x3a5   :  { %v1098_v44 = vsel %vm1095_vm12, %v1097_v41, %v1093_v25 }
 0x3aa   :  { %v1873_v2 = vpop.eup %1872 }
 0x3ab   :  { %v1105_v12 = vmul.f32 %v1873_v2, %v1098_v44 }
 0x3ad   :  { %1107 = vst [vmem:[#allocation10 + $0x20] sm:$0xff] %v1105_v12  ;;  %v1108_v13 = vpack.c.bf16 %v1105_v12, %v1105_v12 }
 0x3af   :  { %1124 = vmatmul.bf16.vlgmr.msra.gmra.mxu0 %v1108_v13  ;;  %1137 = vmatmul.bf16.vlgmr.msra.gmra.mxu1 %v1108_v13 }
 0x3b0   :  { %1150 = vmatmul.bf16.vlgmr.msra.gmra.mxu2 %v1108_v13  ;;  %1163 = vmatmul.bf16.vlgmr.msra.gmra.mxu3 %v1108_v13 }
 0x3b1   :  { %1366 = vmatpush.bf16.msra.mxu0 %v2137_v16  ;;  %1379 = vmatpush.bf16.msra.mxu1 %v2139_v20 }
 0x3b2   :  { %1392 = vmatpush.bf16.msra.mxu2 %v2141_v21  ;;  %1405 = vmatpush.bf16.msra.mxu3 %v2150_v31  ;;  %v2666_v21 = vld [vmem:[#allocation28_spill] sm:$0xff]  ;;  %v2667_v31 = vld [vmem:[#allocation29_spill] sm:$0xff] }
 0x3b5   :  { %1367 = vmatpush.bf16.msra.mxu0 %v2148_v30  ;;  %1380 = vmatpush.bf16.msra.mxu1 %v2154_v34 }
 0x3b6   :  { %1393 = vmatpush.bf16.msra.mxu2 %v2156_v35  ;;  %1406 = vmatpush.bf16.msra.mxu3 %v2159_v42 }
 0x3b9   :  { %1368 = vmatpush.bf16.msra.mxu0 %v2162_v43  ;;  %1381 = vmatpush.bf16.msra.mxu1 %v2166_v46 }
 0x3ba   :  { %1394 = vmatpush.bf16.msra.mxu2 %v2168_v47  ;;  %1407 = vmatpush.bf16.msra.mxu3 %v2171_v54  ;;  %v2668_v47 = vld [vmem:[#allocation30_spill] sm:$0xff] }
 0x3bd   :  { %1369 = vmatpush.bf16.msra.mxu0 %v2177_v57  ;;  %1382 = vmatpush.bf16.msra.mxu1 %v2181_v59 }
 0x3be   :  { %1395 = vmatpush.bf16.msra.mxu2 %v2183_v60  ;;  %1408 = vmatpush.bf16.msra.mxu3 %v2186_v3 }
 0x3c1   :  { %1370 = vmatpush.bf16.msra.mxu0 %v2189_v6  ;;  %1383 = vmatpush.bf16.msra.mxu1 %v2193_v7 }
 0x3c2   :  { %1396 = vmatpush.bf16.msra.mxu2 %v2195_v8  ;;  %1409 = vmatpush.bf16.msra.mxu3 %v2199_v15 }
 0x3c5   :  { %1371 = vmatpush.bf16.msra.mxu0 %v2205_v17  ;;  %1384 = vmatpush.bf16.msra.mxu1 %v2209_v22 }
 0x3c6   :  { %1397 = vmatpush.bf16.msra.mxu2 %v2211_v23  ;;  %1410 = vmatpush.bf16.msra.mxu3 %v2214_v32 }
 0x3c9   :  { %1372 = vmatpush.bf16.msra.mxu0 %v2217_v33  ;;  %1385 = vmatpush.bf16.msra.mxu1 %v2221_v38  ;;  %v2669_v33 = vld [vmem:[#allocation31_spill] sm:$0xff] }
 0x3ca   :  { %1398 = vmatpush.bf16.msra.mxu2 %v2223_v39  ;;  %1411 = vmatpush.bf16.msra.mxu3 %v2226_v48 }
 0x3cd   :  { %1373 = vmatpush.bf16.msra.mxu0 %v2229_v53  ;;  %1386 = vmatpush.bf16.msra.mxu1 %v2233_v55 }
 0x3ce   :  { %1399 = vmatpush.bf16.msra.mxu2 %v2235_v56  ;;  %1412 = vmatpush.bf16.msra.mxu3 %v2241_v61 }
 0x42c   :  { %v1125_v16 = vpop.f32.mrf.mxu0  ;;  %v1138_v20 = vpop.f32.mrf.mxu1 }
 0x42d   :  { %v1126_v30 = vadd.f32 %v1125_v16, %v2666_v21  ;;  %v1139_v34 = vadd.f32 %v1138_v20, %v2667_v31  ;;  %v2670_v16 = vld [vmem:[#allocation32_spill] sm:$0xff]  ;;  %v2671_v21 = vld [vmem:[#allocation33_spill] sm:$0xff] }
 0x42f   :  { %v1736_v35 = vmul.f32 -1.442695, %v1126_v30  ;;  %v1737_v42 = vmul.f32 -1.442695, %v1139_v34 }
 0x431   :  { %1874 = vpow2.f32 %v1736_v35 }
 0x432   :  { %1876 = vpow2.f32 %v1737_v42 }
 0x433   :  { %v1151_v43 = vpop.f32.mrf.mxu2  ;;  %v1164_v46 = vpop.f32.mrf.mxu3 }
 0x434   :  { %v1152_v54 = vadd.f32 %v1151_v43, %v2668_v47  ;;  %v1127_v57 = vpop.f32.mrf.mxu0  ;;  %v1140_v59 = vpop.f32.mrf.mxu1  ;;  %v1165_v38 = vadd.f32 %v1164_v46, %v2669_v33  ;;  %v2672_v43 = vld [vmem:[#allocation34_spill] sm:$0xff] }
 0x436   :  { %v1738_v60 = vmul.f32 -1.442695, %v1152_v54 }
 0x437   :  { %v1875_v3 = vpop.eup %1874 }
 0x438   :  { %v1877_v6 = vpop.eup %1876  ;;  %v1177_v7 = vadd.f32 1.0, %v1875_v3  ;;  %1878 = vpow2.f32 %v1738_v60 }
 0x439   :  { %v1178_v8 = vadd.f32 1.0, %v1877_v6 }
 0x43a   :  { %1880 = vrcp.f32 %v1177_v7  ;;  %v1191_v61 = vand.u32 2147483648, %v1177_v7  ;;  %v1189_v18 = vand.u32 2147483647, %v1177_v7  ;;  %vm1185_vm15 = vweird.f32 %v1177_v7 }
 0x43b   :  { %1882 = vrcp.f32 %v1178_v8  ;;  %v1153_v15 = vpop.f32.mrf.mxu2  ;;  %v1166_v17 = vpop.f32.mrf.mxu3  ;;  %v1206_v52 = vand.u32 2147483648, %v1178_v8  ;;  %v1204_v50 = vand.u32 2147483647, %v1178_v8  ;;  %vm1200_vm0 = vweird.f32 %v1178_v8 }
 0x43c   :  { %v1192_v58 = vor.u32 1.1754944e-38, %v1191_v61  ;;  %vm1190_vm3 = vcmp.eq.f32.partialorder %v1189_v18, 8.507059e+37 }
 0x43d   :  { %v1207_v19 = vor.u32 1.1754944e-38, %v1206_v52  ;;  %vm1205_vm4 = vcmp.eq.f32.partialorder %v1204_v50, 8.507059e+37 }
 0x43e   :  { %v1879_v22 = vpop.eup %1878 }
 0x43f   :  { %v1179_v23 = vadd.f32 1.0, %v1879_v22 }
 0x440   :  { %v1881_v32 = vpop.eup %1880 }
 0x441   :  { %v1883_v39 = vpop.eup %1882  ;;  %v1181_v48 = vmul.f32 %v1881_v32, %v1177_v7  ;;  %1884 = vrcp.f32 %v1179_v23  ;;  %vm1186_vm13 = vweird.f32 %v1881_v32  ;;  %v1221_v40 = vand.u32 2147483648, %v1179_v23 }
 0x442   :  { %v1196_v53 = vmul.f32 %v1883_v39, %v1178_v8  ;;  %1886 = vtanh.f32 %v1165_v38  ;;  %vm1201_vm14 = vweird.f32 %v1883_v39  ;;  %vm1187_vm1 = vmor %vm1185_vm15, %vm1186_vm13  ;;  %vm1215_vm6 = vweird.f32 %v1179_v23 }
 0x443   :  { %v1182_v55 = vsub.f32 1.0, %v1181_v48  ;;  %vm1202_vm2 = vmor %vm1200_vm0, %vm1201_vm14  ;;  %v1219_v63 = vand.u32 2147483647, %v1179_v23  ;;  %v1222_v25 = vor.u32 1.1754944e-38, %v1221_v40 }
 0x444   :  { %v1197_v56 = vsub.f32 1.0, %v1196_v53 }
 0x445   :  { %v1183_v36 = vmul.f32 %v1881_v32, %v1182_v55  ;;  %vm1220_vm8 = vcmp.eq.f32.partialorder %v1219_v63, 8.507059e+37 }
 0x446   :  { %v1198_v49 = vmul.f32 %v1883_v39, %v1197_v56 }
 0x447   :  { %v1885_v0 = vpop.eup %1884  ;;  %v1184_v28 = vadd.f32 %v1881_v32, %v1183_v36 }
 0x448   :  { %v1211_v24 = vmul.f32 %v1885_v0, %v1179_v23  ;;  %v1199_v11 = vadd.f32 %v1883_v39, %v1198_v49  ;;  %v1887_v29 = vpop.eup %1886  ;;  %vm1216_vm5 = vweird.f32 %v1885_v0  ;;  %v2673_v23 = vld [vmem:[#allocation35_spill] sm:$0xff] }
 0x449   :  { %v1188_v5 = vsel %vm1187_vm1, %v1881_v32, %v1184_v28  ;;  %vm1217_vm7 = vmor %vm1215_vm6, %vm1216_vm5 }
 0x44a   :  { %v1212_v27 = vsub.f32 1.0, %v1211_v24  ;;  %v1193_v51 = vsel %vm1190_vm3, %v1192_v58, %v1188_v5  ;;  %v1203_v9 = vsel %vm1202_vm2, %v1883_v39, %v1199_v11 }
 0x44b   :  { %v1208_v14 = vsel %vm1205_vm4, %v1207_v19, %v1203_v9  ;;  %v1227_v62 = vmul.f32 %v1887_v29, %v1193_v51 }
 0x44c   :  { %v1213_v37 = vmul.f32 %v1885_v0, %v1212_v27  ;;  %v1226_v1 = vmul.f32 %v1208_v14, %v2560_v45 }
 0x44e   :  { %v2600_v10 = vadd.f32 %v1227_v62, %v1226_v1  ;;  %v1214_v26 = vadd.f32 %v1885_v0, %v1213_v37 }
 0x450   :  { %1888 = vtanh.f32 %v2600_v10  ;;  %v1218_v4 = vsel %vm1217_vm7, %v1885_v0, %v1214_v26 }
 0x451   :  { %v1223_v2 = vsel %vm1220_vm8, %v1222_v25, %v1218_v4 }
 0x456   :  { %v1889_v41 = vpop.eup %1888 }
 0x457   :  { %v1230_v44 = vmul.f32 %v1889_v41, %v1223_v2 }
 0x459   :  { %1232 = vst [vmem:[#allocation10 + $0x28] sm:$0xff] %v1230_v44  ;;  %v1233_v12 = vpack.c.bf16 %v1230_v44, %v1230_v44 }
 0x45b   :  { %1249 = vmatmul.bf16.vlgmr.msrb.gmra.mxu0 %v1233_v12  ;;  %1262 = vmatmul.bf16.vlgmr.msrb.gmra.mxu1 %v1233_v12 }
 0x45c   :  { %1275 = vmatmul.bf16.vlgmr.msrb.gmra.mxu2 %v1233_v12  ;;  %1288 = vmatmul.bf16.vlgmr.msrb.gmra.mxu3 %v1233_v12 }
 0x4d8   :  { %v1250_v45 = vpop.f32.mrf.mxu0  ;;  %v1263_v13 = vpop.f32.mrf.mxu1 }
 0x4d9   :  { %v1251_v20 = vadd.f32 %v1250_v45, %v2670_v16  ;;  %v1264_v30 = vadd.f32 %v1263_v13, %v2671_v21  ;;  %v2674_v45 = vld [vmem:[#allocation36_spill] sm:$0xff]  ;;  %v2675_v16 = vld [vmem:[#allocation37_spill] sm:$0xff] }
 0x4db   :  { %v1739_v31 = vmul.f32 -1.442695, %v1251_v20  ;;  %v1740_v34 = vmul.f32 -1.442695, %v1264_v30 }
 0x4dd   :  { %1890 = vpow2.f32 %v1739_v31 }
 0x4de   :  { %1892 = vpow2.f32 %v1740_v34 }
 0x4df   :  { %v1276_v35 = vpop.f32.mrf.mxu2  ;;  %v1289_v42 = vpop.f32.mrf.mxu3 }
 0x4e0   :  { %v1277_v46 = vadd.f32 %v1276_v35, %v2672_v43  ;;  %v1252_v47 = vpop.f32.mrf.mxu0  ;;  %v1265_v54 = vpop.f32.mrf.mxu1  ;;  %v1290_v32 = vadd.f32 %v1289_v42, %v2673_v23  ;;  %v2676_v35 = vld [vmem:[#allocation38_spill] sm:$0xff] }
 0x4e2   :  { %v1741_v57 = vmul.f32 -1.442695, %v1277_v46 }
 0x4e3   :  { %v1891_v59 = vpop.eup %1890 }
 0x4e4   :  { %v1893_v60 = vpop.eup %1892  ;;  %v1302_v3 = vadd.f32 1.0, %v1891_v59  ;;  %1894 = vpow2.f32 %v1741_v57 }
 0x4e5   :  { %v1303_v6 = vadd.f32 1.0, %v1893_v60 }
 0x4e6   :  { %1896 = vrcp.f32 %v1302_v3  ;;  %v1316_v55 = vand.u32 2147483648, %v1302_v3  ;;  %v1314_v52 = vand.u32 2147483647, %v1302_v3  ;;  %vm1310_vm11 = vweird.f32 %v1302_v3 }
 0x4e7   :  { %1898 = vrcp.f32 %v1303_v6  ;;  %v1278_v7 = vpop.f32.mrf.mxu2  ;;  %v1291_v8 = vpop.f32.mrf.mxu3  ;;  %v1331_v56 = vand.u32 2147483648, %v1303_v6  ;;  %v1329_v18 = vand.u32 2147483647, %v1303_v6  ;;  %vm1325_vm12 = vweird.f32 %v1303_v6 }
 0x4e8   :  { %v1317_v28 = vor.u32 1.1754944e-38, %v1316_v55  ;;  %vm1315_vm15 = vcmp.eq.f32.partialorder %v1314_v52, 8.507059e+37 }
 0x4e9   :  { %v1332_v58 = vor.u32 1.1754944e-38, %v1331_v56  ;;  %vm1330_vm0 = vcmp.eq.f32.partialorder %v1329_v18, 8.507059e+37 }
 0x4ea   :  { %v1895_v15 = vpop.eup %1894 }
 0x4eb   :  { %v1304_v17 = vadd.f32 1.0, %v1895_v15 }
 0x4ec   :  { %v1897_v22 = vpop.eup %1896 }
 0x4ed   :  { %v1899_v33 = vpop.eup %1898  ;;  %v1306_v38 = vmul.f32 %v1897_v22, %v1302_v3  ;;  %1900 = vrcp.f32 %v1304_v17  ;;  %vm1311_vm9 = vweird.f32 %v1897_v22  ;;  %v1346_v26 = vand.u32 2147483648, %v1304_v17 }
 0x4ee   :  { %v1321_v39 = vmul.f32 %v1899_v33, %v1303_v6  ;;  %1902 = vtanh.f32 %v1290_v32  ;;  %vm1326_vm10 = vweird.f32 %v1899_v33  ;;  %vm1312_vm13 = vmor %vm1310_vm11, %vm1311_vm9  ;;  %vm1340_vm2 = vweird.f32 %v1304_v17 }
 0x4ef   :  { %v1307_v48 = vsub.f32 1.0, %v1306_v38  ;;  %vm1327_vm14 = vmor %vm1325_vm12, %vm1326_vm10  ;;  %v1344_v40 = vand.u32 2147483647, %v1304_v17  ;;  %v1347_v4 = vor.u32 1.1754944e-38, %v1346_v26 }
 0x4f0   :  { %v1322_v53 = vsub.f32 1.0, %v1321_v39 }
 0x4f1   :  { %v1308_v61 = vmul.f32 %v1897_v22, %v1307_v48  ;;  %vm1345_vm4 = vcmp.eq.f32.partialorder %v1344_v40, 8.507059e+37 }
 0x4f2   :  { %v1323_v36 = vmul.f32 %v1899_v33, %v1322_v53 }
 0x4f3   :  { %v1901_v49 = vpop.eup %1900  ;;  %v1309_v50 = vadd.f32 %v1897_v22, %v1308_v61 }
 0x4f4   :  { %v1336_v0 = vmul.f32 %v1901_v49, %v1304_v17  ;;  %v1324_v24 = vadd.f32 %v1899_v33, %v1323_v36  ;;  %v1903_v19 = vpop.eup %1902  ;;  %vm1341_vm1 = vweird.f32 %v1901_v49  ;;  %v2677_v17 = vld [vmem:[#allocation39_spill] sm:$0xff] }
 0x4f5   :  { %v1313_v11 = vsel %vm1312_vm13, %v1897_v22, %v1309_v50  ;;  %vm1342_vm3 = vmor %vm1340_vm2, %vm1341_vm1 }
 0x4f6   :  { %v1337_v5 = vsub.f32 1.0, %v1336_v0  ;;  %v1318_v29 = vsel %vm1315_vm15, %v1317_v28, %v1313_v11  ;;  %v1328_v27 = vsel %vm1327_vm14, %v1899_v33, %v1324_v24 }
 0x4f7   :  { %v1333_v51 = vsel %vm1330_vm0, %v1332_v58, %v1328_v27  ;;  %v1352_v9 = vmul.f32 %v1903_v19, %v1318_v29 }
 0x4f8   :  { %v1338_v14 = vmul.f32 %v1901_v49, %v1337_v5  ;;  %v1351_v62 = vmul.f32 %v1333_v51, %v2600_v10 }
 0x4fa   :  { %v2608_v37 = vadd.f32 %v1352_v9, %v1351_v62  ;;  %v1339_v1 = vadd.f32 %v1901_v49, %v1338_v14 }
 0x4fc   :  { %1904 = vtanh.f32 %v2608_v37  ;;  %v1343_v63 = vsel %vm1342_vm3, %v1901_v49, %v1339_v1 }
 0x4fd   :  { %v1348_v41 = vsel %vm1345_vm4, %v1347_v4, %v1343_v63 }
 0x502   :  { %v1905_v25 = vpop.eup %1904 }
 0x503   :  { %v1355_v2 = vmul.f32 %v1905_v25, %v1348_v41 }
 0x505   :  { %1357 = vst [vmem:[#allocation10 + $0x30] sm:$0xff] %v1355_v2  ;;  %v1358_v44 = vpack.c.bf16 %v1355_v2, %v1355_v2 }
 0x507   :  { %1374 = vmatmul.bf16.vlgmr.msra.gmra.mxu0 %v1358_v44  ;;  %1387 = vmatmul.bf16.vlgmr.msra.gmra.mxu1 %v1358_v44 }
 0x508   :  { %1400 = vmatmul.bf16.vlgmr.msra.gmra.mxu2 %v1358_v44  ;;  %1413 = vmatmul.bf16.vlgmr.msra.gmra.mxu3 %v1358_v44 }
 0x584   :  { %v1375_v10 = vpop.f32.mrf.mxu0  ;;  %v1388_v12 = vpop.f32.mrf.mxu1 }
 0x585   :  { %v1376_v13 = vadd.f32 %v1375_v10, %v2674_v45  ;;  %v1389_v20 = vadd.f32 %v1388_v12, %v2675_v16 }
 0x587   :  { %v1742_v21 = vmul.f32 -1.442695, %v1376_v13  ;;  %v1743_v30 = vmul.f32 -1.442695, %v1389_v20 }
 0x589   :  { %1906 = vpow2.f32 %v1742_v21 }
 0x58a   :  { %1908 = vpow2.f32 %v1743_v30 }
 0x58b   :  { %v1401_v31 = vpop.f32.mrf.mxu2  ;;  %v1414_v34 = vpop.f32.mrf.mxu3 }
 0x58c   :  { %v1402_v42 = vadd.f32 %v1401_v31, %v2676_v35  ;;  %v1377_v43 = vpop.f32.mrf.mxu0  ;;  %v1390_v46 = vpop.f32.mrf.mxu1  ;;  %v1415_v22 = vadd.f32 %v1414_v34, %v2677_v17 }
 0x58e   :  { %v1744_v47 = vmul.f32 -1.442695, %v1402_v42 }
 0x58f   :  { %v1907_v54 = vpop.eup %1906 }
 0x590   :  { %v1909_v57 = vpop.eup %1908  ;;  %v1427_v59 = vadd.f32 1.0, %v1907_v54  ;;  %1910 = vpow2.f32 %v1744_v47 }
 0x591   :  { %v1428_v60 = vadd.f32 1.0, %v1909_v57 }
 0x592   :  { %1912 = vrcp.f32 %v1427_v59  ;;  %v1441_v48 = vand.u32 2147483648, %v1427_v59  ;;  %v1439_v56 = vand.u32 2147483647, %v1427_v59  ;;  %vm1435_vm7 = vweird.f32 %v1427_v59 }
 0x593   :  { %1914 = vrcp.f32 %v1428_v60  ;;  %v1403_v3 = vpop.f32.mrf.mxu2  ;;  %v1416_v6 = vpop.f32.mrf.mxu3  ;;  %v1456_v53 = vand.u32 2147483648, %v1428_v60  ;;  %v1454_v52 = vand.u32 2147483647, %v1428_v60  ;;  %vm1450_vm8 = vweird.f32 %v1428_v60 }
 0x594   :  { %v1442_v50 = vor.u32 1.1754944e-38, %v1441_v48  ;;  %vm1440_vm11 = vcmp.eq.f32.partialorder %v1439_v56, 8.507059e+37 }
 0x595   :  { %v1457_v28 = vor.u32 1.1754944e-38, %v1456_v53  ;;  %vm1455_vm12 = vcmp.eq.f32.partialorder %v1454_v52, 8.507059e+37 }
 0x596   :  { %v1911_v7 = vpop.eup %1910 }
 0x597   :  { %v1429_v8 = vadd.f32 1.0, %v1911_v7 }
 0x598   :  { %v1913_v15 = vpop.eup %1912 }
 0x599   :  { %v1915_v23 = vpop.eup %1914  ;;  %v1431_v32 = vmul.f32 %v1913_v15, %v1427_v59  ;;  %1916 = vrcp.f32 %v1429_v8  ;;  %vm1436_vm5 = vweird.f32 %v1913_v15  ;;  %v1471_v1 = vand.u32 2147483648, %v1429_v8 }
 0x59a   :  { %v1446_v33 = vmul.f32 %v1915_v23, %v1428_v60  ;;  %1918 = vtanh.f32 %v1415_v22  ;;  %vm1451_vm6 = vweird.f32 %v1915_v23  ;;  %vm1437_vm9 = vmor %vm1435_vm7, %vm1436_vm5  ;;  %vm1465_vm14 = vweird.f32 %v1429_v8 }
 0x59b   :  { %v1432_v38 = vsub.f32 1.0, %v1431_v32  ;;  %vm1452_vm10 = vmor %vm1450_vm8, %vm1451_vm6  ;;  %v1469_v26 = vand.u32 2147483647, %v1429_v8  ;;  %v1472_v63 = vor.u32 1.1754944e-38, %v1471_v1 }
 0x59c   :  { %v1447_v39 = vsub.f32 1.0, %v1446_v33 }
 0x59d   :  { %v1433_v55 = vmul.f32 %v1913_v15, %v1432_v38  ;;  %vm1470_vm0 = vcmp.eq.f32.partialorder %v1469_v26, 8.507059e+37 }
 0x59e   :  { %v1448_v61 = vmul.f32 %v1915_v23, %v1447_v39 }
 0x59f   :  { %v1917_v36 = vpop.eup %1916  ;;  %v1434_v18 = vadd.f32 %v1913_v15, %v1433_v55 }
 0x5a0   :  { %v1461_v49 = vmul.f32 %v1917_v36, %v1429_v8  ;;  %v1449_v0 = vadd.f32 %v1915_v23, %v1448_v61  ;;  %v1919_v58 = vpop.eup %1918  ;;  %vm1466_vm13 = vweird.f32 %v1917_v36 }
 0x5a1   :  { %v1438_v24 = vsel %vm1437_vm9, %v1913_v15, %v1434_v18  ;;  %vm1467_vm15 = vmor %vm1465_vm14, %vm1466_vm13 }
 0x5a2   :  { %v1462_v11 = vsub.f32 1.0, %v1461_v49  ;;  %v1443_v19 = vsel %vm1440_vm11, %v1442_v50, %v1438_v24  ;;  %v1453_v5 = vsel %vm1452_vm10, %v1915_v23, %v1449_v0 }
 0x5a3   :  { %v1458_v29 = vsel %vm1455_vm12, %v1457_v28, %v1453_v5  ;;  %v1477_v27 = vmul.f32 %v1919_v58, %v1443_v19 }
 0x5a4   :  { %v1476_v51 = vmul.f32 %v1458_v29, %v2608_v37  ;;  %v1463_v9 = vmul.f32 %v1917_v36, %v1462_v11 }
 0x5a6   :  { %v1478_v14 = vadd.f32 %v1477_v27, %v1476_v51  ;;  %v1464_v62 = vadd.f32 %v1917_v36, %v1463_v9 }
 0x5a8   :  { %1920 = vtanh.f32 %v1478_v14  ;;  %1486 = vst [vmem:[#allocation13] sm:$0xff] %v1478_v14  ;;  %v1468_v40 = vsel %vm1467_vm15, %v1917_v36, %v1464_v62 }
 0x5a9   :  { %v1473_v4 = vsel %vm1470_vm0, %v1472_v63, %v1468_v40 }
 0x5ae   :  { %v1921_v37 = vpop.eup %1920 }
 0x5af   :  { %v1480_v25 = vmul.f32 %v1921_v37, %v1473_v4 }
 0x5b1   :  { %1482 = vst [vmem:[#allocation10 + $0x38] sm:$0xff] %v1480_v25 }
 0x5b2   :  { %1485 = vst [vmem:[#allocation11] sm:$0xff] %v1480_v25  ;;  %1499 = dma.vmem_to_hbm [thread:$0]  %s1492_s17, 1024, %s1494_s4, [#allocation7], %s2057_s6, %s2057_s6, %s2058_s7  }
 0x5b3   :  { %1510 = dma.vmem_to_hbm [thread:$0]  %s1506_s21, 128, %s1508_s24, [#allocation12]  }
 0x5b4   :  { %1521 = dma.vmem_to_hbm [thread:$0]  %s1517_s26, 128, %s1519_s29, [#allocation12]  }
 0x5b5   :  { %2046 = dma.done.wait [#allocation7], 1024  }
 0x5b6   :  { %2047 = vsyncadd [#allocation7], 4294966272 }
 0x5b7   :  { %2048 = dma.done.wait [#allocation12], 256  }
 0x5b8   :  { %2049 = vsyncadd [#allocation12], 4294967040 }
 0x5b9   :  { %1534 = vsyncpa [#allocation6], 1 }
 0x5ba   :  { %1535 = vsyncpa [#allocation9], 1 }
 0x5bb   :  { %1536 = vsyncpa [#allocation7], 1 }
 0x5bc   :  { %1537 = vsyncpa [#allocation12], 1 }

</bundles_post_ra>
